<compile_context>
chip_gen: v7x
topology: tpu7x:2x2x1
jax: 0.10.0
libtpu: 0.0.40
codegen_flags: <defaults>
</compile_context>

<pallas_src>
import functools
import math

import jax
import jax.numpy as jnp
from jax.experimental import pallas as pl
from jax.experimental.pallas import tpu as pltpu


def _round_up(x, m):
    return ((x + m - 1) // m) * m


# --------------------------------------------------------------------------
# kernels
# --------------------------------------------------------------------------

def _prop1_kernel(a_ref, xbf_ref, xrow_ref, w1_ref, wfc_ref, g_ref, b_ref,
                  w2a_ref, w2b_ref, out_ref, acc_ref, *, tk):
    """Fused layer1 + fc1 + layer2-pre-weight:
         prop = A @ X                    (streamed k-loop, f32 acc)
         x1   = relu(prop @ W1)          (== relu(A @ (X @ W1)))
         f1   = relu(LayerNorm(x @ Wfc))
         out  = bf16(x1 @ W2a + f1 @ W2b)
    """
    k = pl.program_id(1)

    @pl.when(k == 0)
    def _():
        acc_ref[...] = jnp.zeros_like(acc_ref)

    start = pl.multiple_of(k * tk, tk)
    acc_ref[...] += jnp.dot(a_ref[...], xbf_ref[pl.ds(start, tk), :],
                            preferred_element_type=jnp.float32)

    @pl.when(k == pl.num_programs(1) - 1)
    def _():
        x1 = jnp.maximum(
            jnp.dot(acc_ref[...], w1_ref[...],
                    preferred_element_type=jnp.float32), 0.0)

        xf = jnp.dot(xrow_ref[...], wfc_ref[...],
                     preferred_element_type=jnp.float32)
        mu = jnp.mean(xf, axis=-1, keepdims=True)
        xc = xf - mu
        var = jnp.mean(xc * xc, axis=-1, keepdims=True)
        f1 = jnp.maximum(
            xc * jax.lax.rsqrt(var + 1e-5) * g_ref[...] + b_ref[...], 0.0)

        pre2 = (jnp.dot(x1, w2a_ref[...], preferred_element_type=jnp.float32) +
                jnp.dot(f1, w2b_ref[...], preferred_element_type=jnp.float32))
        out_ref[...] = pre2.astype(out_ref.dtype)


def _prop2_kernel(a_ref, h_ref, w3_ref, out_ref, acc_ref, *, tk):
    """x2 = relu(A @ pre2);  out = bf16(x2 @ W3)  (layer3 weight pre-prop)."""
    k = pl.program_id(1)

    @pl.when(k == 0)
    def _():
        acc_ref[...] = jnp.zeros_like(acc_ref)

    start = pl.multiple_of(k * tk, tk)
    acc_ref[...] += jnp.dot(a_ref[...], h_ref[pl.ds(start, tk), :],
                            preferred_element_type=jnp.float32)

    @pl.when(k == pl.num_programs(1) - 1)
    def _():
        x2 = jnp.maximum(acc_ref[...], 0.0)
        h2 = jnp.dot(x2, w3_ref[...], preferred_element_type=jnp.float32)
        out_ref[...] = h2.astype(out_ref.dtype)


def _prop3_kernel(a_ref, h_ref, out_ref, acc_ref, *, tk, tm):
    """x3 = relu(A @ h2);  out = per-row-tile partial sums of x3 (sum_nodes)."""
    k = pl.program_id(1)

    @pl.when(k == 0)
    def _():
        acc_ref[...] = jnp.zeros_like(acc_ref)

    start = pl.multiple_of(k * tk, tk)
    acc_ref[...] += jnp.dot(a_ref[...], h_ref[pl.ds(start, tk), :],
                            preferred_element_type=jnp.float32)

    @pl.when(k == pl.num_programs(1) - 1)
    def _():
        x3 = jnp.maximum(acc_ref[...], 0.0)
        # Fold tm rows into an (8, op) lane-dense partial (final reduce in JAX).
        part = x3[0:8, :]
        for j in range(1, tm // 8):
            part = part + x3[8 * j:8 * (j + 1), :]
        out_ref[...] = part


# --------------------------------------------------------------------------
# wrapper
# --------------------------------------------------------------------------

def gcn_forward(a_norm, x, params, *, tm=256, tk=256):
    """a_norm: [N, N] f32 dense normalized propagation matrix; x: [N, in_dim]."""
    n, in_dim = x.shape
    h4 = params["w1"].shape[1]
    out_dim = params["w3"].shape[1]

    f32, bf16 = jnp.float32, jnp.bfloat16
    ip = _round_up(max(in_dim, 128), 128)    # lane-dense input width
    fp = _round_up(max(h4, 128), 128)        # lane-dense hidden width
    op = _round_up(max(out_dim, 128), 128)   # lane-dense output width

    tile = (tm * tk) // math.gcd(tm, tk)
    np_ = _round_up(max(n, 1), tile)
    n_i, n_k = np_ // tm, np_ // tk

    # --- pad graph / features / weights (padded A rows/cols are exact zeros,
    #     so padded nodes never contribute to any propagation or the readout) --
    a_p = jnp.zeros((np_, np_), bf16).at[:n, :n].set(a_norm.astype(bf16))
    x_bf = jnp.zeros((np_, ip), bf16).at[:n, :in_dim].set(x.astype(bf16))
    x_f = jnp.zeros((np_, in_dim), f32).at[:n, :].set(x.astype(f32))

    w1_p = jnp.zeros((ip, fp), f32).at[:in_dim, :h4].set(params["w1"])
    w2a_p = jnp.zeros((fp, fp), f32).at[:h4, :h4].set(params["w2a"])
    w2b_p = jnp.zeros((h4, fp), f32).at[:, :h4].set(params["w2b"])
    w3_p = jnp.zeros((fp, op), f32).at[:h4, :out_dim].set(params["w3"])
    wfc = params["wfc"].astype(f32)
    ln_g = params["ln_g"].reshape(1, h4).astype(f32)
    ln_b = params["ln_b"].reshape(1, h4).astype(f32)

    def _cparams(sems, *nbytes):
        need = 2 * sum(int(b) for b in nbytes) + (4 << 20)   # dbl-buffer + slack
        return pltpu.CompilerParams(
            dimension_semantics=sems,
            vmem_limit_bytes=int(min(max(need, 24 << 20), 48 << 20)))

    a_spec = pl.BlockSpec((tm, tk), lambda i, k: (i, k))
    prop_sems = ("parallel", "arbitrary")
    grid = (n_i, n_k)

    # -------- stage 1 (fused): prop X, layer1 W+relu, fc1 branch, layer2 W ----
    pre2 = pl.pallas_call(
        functools.partial(_prop1_kernel, tk=tk),
        out_shape=jax.ShapeDtypeStruct((np_, fp), bf16),
        grid=grid,
        in_specs=[a_spec,
                  pl.BlockSpec((np_, ip), lambda i, k: (0, 0)),     # X bf16 resident
                  pl.BlockSpec((tm, in_dim), lambda i, k: (i, 0)),  # X f32 row tile
                  pl.BlockSpec((ip, fp), lambda i, k: (0, 0)),
                  pl.BlockSpec((in_dim, h4), lambda i, k: (0, 0)),
                  pl.BlockSpec((1, h4), lambda i, k: (0, 0)),
                  pl.BlockSpec((1, h4), lambda i, k: (0, 0)),
                  pl.BlockSpec((fp, fp), lambda i, k: (0, 0)),
                  pl.BlockSpec((h4, fp), lambda i, k: (0, 0))],
        out_specs=pl.BlockSpec((tm, fp), lambda i, k: (i, 0)),
        scratch_shapes=[pltpu.VMEM((tm, ip), f32)],
        compiler_params=_cparams(prop_sems,
                                 tm * tk * 2, np_ * ip * 2, tm * in_dim * 4,
                                 ip * fp * 4, in_dim * h4 * 4, 2 * h4 * 4,
                                 fp * fp * 4, h4 * fp * 4,
                                 tm * fp * 2, tm * ip * 4),
        cost_estimate=pl.CostEstimate(
            flops=(2 * np_ * np_ * ip + 2 * np_ * ip * fp
                   + 2 * np_ * in_dim * h4 + 2 * np_ * fp * fp
                   + 2 * np_ * h4 * fp),
            transcendentals=np_,
            bytes_accessed=(np_ * np_ * 2 + np_ * ip * 2
                            + np_ * in_dim * 4 + np_ * fp * 2)),
    )(a_p, x_bf, x_f, w1_p, wfc, ln_g, ln_b, w2a_p, w2b_p)

    # -------- stage 2: x2 = relu(A @ pre2); h2 = x2 @ W3 ----------------------
    h2 = pl.pallas_call(
        functools.partial(_prop2_kernel, tk=tk),
        out_shape=jax.ShapeDtypeStruct((np_, op), bf16),
        grid=grid,
        in_specs=[a_spec,
                  pl.BlockSpec((np_, fp), lambda i, k: (0, 0)),   # pre2 resident
                  pl.BlockSpec((fp, op), lambda i, k: (0, 0))],
        out_specs=pl.BlockSpec((tm, op), lambda i, k: (i, 0)),
        scratch_shapes=[pltpu.VMEM((tm, fp), f32)],
        compiler_params=_cparams(prop_sems,
                                 tm * tk * 2, np_ * fp * 2, fp * op * 4,
                                 tm * op * 2, tm * fp * 4),
        cost_estimate=pl.CostEstimate(
            flops=2 * np_ * np_ * fp + 2 * np_ * fp * op,
            transcendentals=0,
            bytes_accessed=np_ * np_ * 2 + np_ * fp * 2 + np_ * op * 2),
    )(a_p, pre2, w3_p)

    # -------- stage 3: x3 = relu(A @ h2); readout partial sums ----------------
    partials = pl.pallas_call(
        functools.partial(_prop3_kernel, tk=tk, tm=tm),
        out_shape=jax.ShapeDtypeStruct((n_i * 8, op), f32),
        grid=grid,
        in_specs=[a_spec,
                  pl.BlockSpec((np_, op), lambda i, k: (0, 0))],  # h2 resident
        out_specs=pl.BlockSpec((8, op), lambda i, k: (i, 0)),
        scratch_shapes=[pltpu.VMEM((tm, op), f32)],
        compiler_params=_cparams(prop_sems,
                                 tm * tk * 2, np_ * op * 2,
                                 8 * op * 4, tm * op * 4),
        cost_estimate=pl.CostEstimate(
            flops=2 * np_ * np_ * op,
            transcendentals=0,
            bytes_accessed=np_ * np_ * 2 + np_ * op * 2 + n_i * 8 * op * 4),
    )(a_p, h2)

    readout = jnp.sum(partials, axis=0, keepdims=True)[:, :out_dim]
    return readout


def build_norm_adjacency(adj_mask, edge_w):
    """adj_mask[src, dst] in {0,1}, edge_w[src, dst] >= 0 (0 where no edge)."""
    out_deg = jnp.clip(jnp.sum(adj_mask, axis=1), 1.0, None)   # per src
    in_deg = jnp.clip(jnp.sum(adj_mask, axis=0), 1.0, None)    # per dst
    # A_norm[dst, src]
    a = edge_w.T * (1.0 / jnp.sqrt(in_deg))[:, None] * \
        (1.0 / jnp.sqrt(out_deg))[None, :]
    return a.astype(jnp.float32)


if __name__ == "__main__":
    key = jax.random.PRNGKey(0)
    N, in_dim, hidden_dim, out_dim = 400, 32, 8, 16
    H4 = hidden_dim * 4

    k_adj, k_w, k_x, k1, k2, k3, k4, k5, k6 = jax.random.split(key, 9)

    # deterministic synthetic graph + edge weights
    adj_mask = (jax.random.uniform(k_adj, (N, N)) < 0.1).astype(jnp.float32)
    edge_w = adj_mask * jax.random.uniform(k_w, (N, N), minval=0.1, maxval=1.0)
    a_norm = build_norm_adjacency(adj_mask, edge_w)

    # node features
    x = jax.random.normal(k_x, (N, in_dim), dtype=jnp.float32)

    # deterministic parameter init (shapes from GCN.__init__, stored [in, out])
    w2_full = jax.random.normal(k3, (2 * H4, H4), jnp.float32) * 0.1
    params = {
        "w1": jax.random.normal(k1, (in_dim, H4), jnp.float32) * 0.1,   # layer1
        "wfc": jax.random.normal(k2, (in_dim, H4), jnp.float32) * 0.1,  # fc1
        "ln_g": 1.0 + 0.1 * jax.random.normal(k5, (1, H4), jnp.float32),
        "ln_b": 0.1 * jax.random.normal(k6, (1, H4), jnp.float32),
        "w2a": w2_full[:H4],   # multiplies x1 half of cat([x1, f1])
        "w2b": w2_full[H4:],   # multiplies f1 half
        "w3": jax.random.normal(k4, (H4, out_dim), jnp.float32) * 0.1,  # layer3
    }

    out = gcn_forward(a_norm, x, params, tm=256, tk=256)
    out = jax.block_until_ready(out)

    # plain-JAX reference mirroring the kernel numerics (bf16 A / bf16 X for the
    # propagations, f32 accumulation, f32 elementwise / weight matmuls)
    hi = jax.lax.Precision.HIGHEST
    a_bf = a_norm.astype(jnp.bfloat16)
    x_bf = x.astype(jnp.bfloat16)
    propr = jnp.dot(a_bf, x_bf, preferred_element_type=jnp.float32)
    x1r = jnp.maximum(jnp.dot(propr, params["w1"], precision=hi), 0.0)
    xf = jnp.dot(x, params["wfc"], precision=hi)
    mu = xf.mean(-1, keepdims=True)
    var = ((xf - mu) ** 2).mean(-1, keepdims=True)
    f1r = jnp.maximum((xf - mu) * jax.lax.rsqrt(var + 1e-5) * params["ln_g"]
                      + params["ln_b"], 0.0)
    pre2r = (jnp.dot(x1r, params["w2a"], precision=hi)
             + jnp.dot(f1r, params["w2b"], precision=hi)).astype(jnp.bfloat16)
    x2r = jnp.maximum(jnp.dot(a_bf, pre2r, preferred_element_type=jnp.float32), 0.0)
    h2r = jnp.dot(x2r, params["w3"], precision=hi).astype(jnp.bfloat16)
    x3r = jnp.maximum(jnp.dot(a_bf, h2r, preferred_element_type=jnp.float32), 0.0)
    ref = jnp.sum(x3r, axis=0, keepdims=True)

    assert out.shape == (1, out_dim)
    assert jnp.allclose(out, ref, atol=5e-3, rtol=2e-2), (out, ref)

    print("KERNEL_OK")
</pallas_src>

<mosaic_0001>
module attributes {stable_mosaic.version = 11 : i64} {
  func.func @_prop1_kernel(%arg0: i32, %arg1: i32, %arg2: memref<256x256xbf16, #tpu.memory_space<vmem>>, %arg3: memref<512x128xbf16, #tpu.memory_space<vmem>>, %arg4: memref<256x32xf32, #tpu.memory_space<vmem>>, %arg5: memref<128x128xf32, #tpu.memory_space<vmem>>, %arg6: memref<32x32xf32, #tpu.memory_space<vmem>>, %arg7: memref<1x32xf32, #tpu.memory_space<vmem>>, %arg8: memref<1x32xf32, #tpu.memory_space<vmem>>, %arg9: memref<128x128xf32, #tpu.memory_space<vmem>>, %arg10: memref<32x128xf32, #tpu.memory_space<vmem>>, %arg11: memref<256x128xbf16, #tpu.memory_space<vmem>>, %arg12: memref<256x128xf32, #tpu.memory_space<vmem>>) attributes {dimension_semantics = [#tpu.dimension_semantics<parallel>, #tpu.dimension_semantics<arbitrary>], iteration_bounds = array<i64: 2, 2>, scalar_prefetch = 0 : i64, scratch_operands = 1 : i64, tpu.core_type = #tpu.core_type<tc>, window_params = [{transform_indices = @transform_0, window_bounds = array<i64: 256, 256>}, {pipeline_mode = #tpu.pipeline_mode<synchronous>, transform_indices = @transform_1, window_bounds = array<i64: 512, 128>}, {transform_indices = @transform_2, window_bounds = array<i64: 256, 32>}, {pipeline_mode = #tpu.pipeline_mode<synchronous>, transform_indices = @transform_3, window_bounds = array<i64: 128, 128>}, {pipeline_mode = #tpu.pipeline_mode<synchronous>, transform_indices = @transform_4, window_bounds = array<i64: 32, 32>}, {pipeline_mode = #tpu.pipeline_mode<synchronous>, transform_indices = @transform_5, window_bounds = array<i64: 1, 32>}, {pipeline_mode = #tpu.pipeline_mode<synchronous>, transform_indices = @transform_6, window_bounds = array<i64: 1, 32>}, {pipeline_mode = #tpu.pipeline_mode<synchronous>, transform_indices = @transform_7, window_bounds = array<i64: 128, 128>}, {pipeline_mode = #tpu.pipeline_mode<synchronous>, transform_indices = @transform_8, window_bounds = array<i64: 32, 128>}, {transform_indices = @transform_9, window_bounds = array<i64: 256, 128>}]} {
    %c0_i32 = arith.constant 0 : i32
    %0 = arith.cmpi eq, %arg1, %c0_i32 : i32
    %1 = arith.extui %0 : i1 to i32
    %c0_i32_0 = arith.constant 0 : i32
    %2 = arith.cmpi ne, %1, %c0_i32_0 : i32
    scf.if %2 {
      %cst_8 = arith.constant 0.000000e+00 : f32
      %15 = vector.broadcast %cst_8 : f32 to vector<256x128xf32>
      %c0_9 = arith.constant 0 : index
      %c0_10 = arith.constant 0 : index
      %16 = vector.load %arg12[%c0_9, %c0_10] : memref<256x128xf32, #tpu.memory_space<vmem>>, vector<256x128xf32>
      tpu.vector_store %arg12[%c0_9, %c0_10], %15 {strides = array<i32>} : memref<256x128xf32, #tpu.memory_space<vmem>>, vector<256x128xf32>,
    } else {
    }
    %c256_i32 = arith.constant 256 : i32
    %3 = arith.muli %arg1, %c256_i32 : i32
    %4 = tpu.assume_multiple %3, 256 : i32
    %c0 = arith.constant 0 : index
    %c0_1 = arith.constant 0 : index
    %5 = vector.load %arg12[%c0, %c0_1] : memref<256x128xf32, #tpu.memory_space<vmem>>, vector<256x128xf32>
    %c0_2 = arith.constant 0 : index
    %c0_3 = arith.constant 0 : index
    %6 = vector.load %arg2[%c0_2, %c0_3] : memref<256x256xbf16, #tpu.memory_space<vmem>>, vector<256x256xbf16>
    %7 = arith.index_cast %4 : i32 to index
    %c0_4 = arith.constant 0 : index
    %8 = vector.load %arg3[%7, %c0_4] : memref<512x128xbf16, #tpu.memory_space<vmem>>, vector<256x128xbf16>
    %cst = arith.constant dense<0.000000e+00> : vector<256x128xf32>
    %9 = tpu.matmul %6, %8, %cst {dimension_numbers = #tpu.dot_dimension_numbers<[1], [0], [0], [1], [0, 0, 1, 1], [], []>} : vector<256x256xbf16>, vector<256x128xbf16>, vector<256x128xf32> -> vector<256x128xf32>
    %10 = arith.addf %5, %9 : vector<256x128xf32>
    %c0_5 = arith.constant 0 : index
    %c0_6 = arith.constant 0 : index
    %11 = vector.load %arg12[%c0_5, %c0_6] : memref<256x128xf32, #tpu.memory_space<vmem>>, vector<256x128xf32>
    tpu.vector_store %arg12[%c0_5, %c0_6], %10 {strides = array<i32>} : memref<256x128xf32, #tpu.memory_space<vmem>>, vector<256x128xf32>,
    %c1_i32 = arith.constant 1 : i32
    %12 = arith.cmpi eq, %arg1, %c1_i32 : i32
    %13 = arith.extui %12 : i1 to i32
    %c0_i32_7 = arith.constant 0 : i32
    %14 = arith.cmpi ne, %13, %c0_i32_7 : i32
    scf.if %14 {
      %c0_8 = arith.constant 0 : index
      %c0_9 = arith.constant 0 : index
      %15 = vector.load %arg12[%c0_8, %c0_9] : memref<256x128xf32, #tpu.memory_space<vmem>>, vector<256x128xf32>
      %c0_10 = arith.constant 0 : index
      %c0_11 = arith.constant 0 : index
      %16 = vector.load %arg5[%c0_10, %c0_11] : memref<128x128xf32, #tpu.memory_space<vmem>>, vector<128x128xf32>
      %cst_12 = arith.constant dense<0.000000e+00> : vector<256x128xf32>
      %17 = tpu.matmul %15, %16, %cst_12 {dimension_numbers = #tpu.dot_dimension_numbers<[1], [0], [0], [1], [0, 0, 1, 1], [], []>} : vector<256x128xf32>, vector<128x128xf32>, vector<256x128xf32> -> vector<256x128xf32>
      %cst_13 = arith.constant 0.000000e+00 : f32
      %18 = vector.broadcast %cst_13 : f32 to vector<256x128xf32>
      %19 = arith.maximumf %17, %18 : vector<256x128xf32>
      %c0_14 = arith.constant 0 : index
      %c0_15 = arith.constant 0 : index
      %20 = vector.load %arg4[%c0_14, %c0_15] : memref<256x32xf32, #tpu.memory_space<vmem>>, vector<256x32xf32>
      %c0_16 = arith.constant 0 : index
      %c0_17 = arith.constant 0 : index
      %21 = vector.load %arg6[%c0_16, %c0_17] : memref<32x32xf32, #tpu.memory_space<vmem>>, vector<32x32xf32>
      %cst_18 = arith.constant dense<0.000000e+00> : vector<256x32xf32>
      %22 = tpu.matmul %20, %21, %cst_18 {dimension_numbers = #tpu.dot_dimension_numbers<[1], [0], [0], [1], [0, 0, 1, 1], [], []>} : vector<256x32xf32>, vector<32x32xf32>, vector<256x32xf32> -> vector<256x32xf32>
      %cst_19 = arith.constant dense<0.000000e+00> : vector<256xf32>
      %23 = vector.multi_reduction <add>, %22, %cst_19 [1] : vector<256x32xf32> to vector<256xf32>
      %24 = vector.shape_cast %23 : vector<256xf32> to vector<256x1xf32>
      %cst_20 = arith.constant 3.200000e+01 : f32
      %25 = vector.broadcast %cst_20 : f32 to vector<256x1xf32>
      %26 = arith.divf %24, %25 : vector<256x1xf32>
      %27 = vector.broadcast %26 : vector<256x1xf32> to vector<256x32xf32>
      %28 = arith.subf %22, %27 : vector<256x32xf32>
      %29 = arith.mulf %28, %28 : vector<256x32xf32>
      %cst_21 = arith.constant dense<0.000000e+00> : vector<256xf32>
      %30 = vector.multi_reduction <add>, %29, %cst_21 [1] : vector<256x32xf32> to vector<256xf32>
      %31 = vector.shape_cast %30 : vector<256xf32> to vector<256x1xf32>
      %cst_22 = arith.constant 3.200000e+01 : f32
      %32 = vector.broadcast %cst_22 : f32 to vector<256x1xf32>
      %33 = arith.divf %31, %32 : vector<256x1xf32>
      %cst_23 = arith.constant 9.99999974E-6 : f32
      %34 = vector.broadcast %cst_23 : f32 to vector<256x1xf32>
      %35 = arith.addf %33, %34 : vector<256x1xf32>
      %36 = math.rsqrt %35 : vector<256x1xf32>
      %37 = vector.broadcast %36 : vector<256x1xf32> to vector<256x32xf32>
      %38 = arith.mulf %28, %37 : vector<256x32xf32>
      %c0_24 = arith.constant 0 : index
      %c0_25 = arith.constant 0 : index
      %39 = vector.load %arg7[%c0_24, %c0_25] : memref<1x32xf32, #tpu.memory_space<vmem>>, vector<1x32xf32>
      %40 = vector.broadcast %39 : vector<1x32xf32> to vector<256x32xf32>
      %41 = arith.mulf %38, %40 : vector<256x32xf32>
      %c0_26 = arith.constant 0 : index
      %c0_27 = arith.constant 0 : index
      %42 = vector.load %arg8[%c0_26, %c0_27] : memref<1x32xf32, #tpu.memory_space<vmem>>, vector<1x32xf32>
      %43 = vector.broadcast %42 : vector<1x32xf32> to vector<256x32xf32>
      %44 = arith.addf %41, %43 : vector<256x32xf32>
      %cst_28 = arith.constant 0.000000e+00 : f32
      %45 = vector.broadcast %cst_28 : f32 to vector<256x32xf32>
      %46 = arith.maximumf %44, %45 : vector<256x32xf32>
      %c0_29 = arith.constant 0 : index
      %c0_30 = arith.constant 0 : index
      %47 = vector.load %arg9[%c0_29, %c0_30] : memref<128x128xf32, #tpu.memory_space<vmem>>, vector<128x128xf32>
      %cst_31 = arith.constant dense<0.000000e+00> : vector<256x128xf32>
      %48 = tpu.matmul %19, %47, %cst_31 {dimension_numbers = #tpu.dot_dimension_numbers<[1], [0], [0], [1], [0, 0, 1, 1], [], []>} : vector<256x128xf32>, vector<128x128xf32>, vector<256x128xf32> -> vector<256x128xf32>
      %c0_32 = arith.constant 0 : index
      %c0_33 = arith.constant 0 : index
      %49 = vector.load %arg10[%c0_32, %c0_33] : memref<32x128xf32, #tpu.memory_space<vmem>>, vector<32x128xf32>
      %cst_34 = arith.constant dense<0.000000e+00> : vector<256x128xf32>
      %50 = tpu.matmul %46, %49, %cst_34 {dimension_numbers = #tpu.dot_dimension_numbers<[1], [0], [0], [1], [0, 0, 1, 1], [], []>} : vector<256x32xf32>, vector<32x128xf32>, vector<256x128xf32> -> vector<256x128xf32>
      %51 = arith.addf %48, %50 : vector<256x128xf32>
      %52 = arith.truncf %51 : vector<256x128xf32> to vector<256x128xbf16>
      %c0_35 = arith.constant 0 : index
      %c0_36 = arith.constant 0 : index
      %53 = vector.load %arg11[%c0_35, %c0_36] : memref<256x128xbf16, #tpu.memory_space<vmem>>, vector<256x128xbf16>
      tpu.vector_store %arg11[%c0_35, %c0_36], %52 {strides = array<i32>} : memref<256x128xbf16, #tpu.memory_space<vmem>>, vector<256x128xbf16>,
    } else {
    }
    return
  }
  func.func @transform_0(%arg0: i32, %arg1: i32) -> (i32, i32) {
    %c0_i32 = arith.constant 0 : i32
    return %arg0, %arg1 : i32, i32
  }
  func.func @transform_1(%arg0: i32, %arg1: i32) -> (i32, i32) {
    %c0_i32 = arith.constant 0 : i32
    %c0_i32_0 = arith.constant 0 : i32
    %c0_i32_1 = arith.constant 0 : i32
    return %c0_i32, %c0_i32_0 : i32, i32
  }
  func.func @transform_2(%arg0: i32, %arg1: i32) -> (i32, i32) {
    %c0_i32 = arith.constant 0 : i32
    %c0_i32_0 = arith.constant 0 : i32
    return %arg0, %c0_i32 : i32, i32
  }
  func.func @transform_3(%arg0: i32, %arg1: i32) -> (i32, i32) {
    %c0_i32 = arith.constant 0 : i32
    %c0_i32_0 = arith.constant 0 : i32
    %c0_i32_1 = arith.constant 0 : i32
    return %c0_i32, %c0_i32_0 : i32, i32
  }
  func.func @transform_4(%arg0: i32, %arg1: i32) -> (i32, i32) {
    %c0_i32 = arith.constant 0 : i32
    %c0_i32_0 = arith.constant 0 : i32
    %c0_i32_1 = arith.constant 0 : i32
    return %c0_i32, %c0_i32_0 : i32, i32
  }
  func.func @transform_5(%arg0: i32, %arg1: i32) -> (i32, i32) {
    %c0_i32 = arith.constant 0 : i32
    %c0_i32_0 = arith.constant 0 : i32
    %c0_i32_1 = arith.constant 0 : i32
    return %c0_i32, %c0_i32_0 : i32, i32
  }
  func.func @transform_6(%arg0: i32, %arg1: i32) -> (i32, i32) {
    %c0_i32 = arith.constant 0 : i32
    %c0_i32_0 = arith.constant 0 : i32
    %c0_i32_1 = arith.constant 0 : i32
    return %c0_i32, %c0_i32_0 : i32, i32
  }
  func.func @transform_7(%arg0: i32, %arg1: i32) -> (i32, i32) {
    %c0_i32 = arith.constant 0 : i32
    %c0_i32_0 = arith.constant 0 : i32
    %c0_i32_1 = arith.constant 0 : i32
    return %c0_i32, %c0_i32_0 : i32, i32
  }
  func.func @transform_8(%arg0: i32, %arg1: i32) -> (i32, i32) {
    %c0_i32 = arith.constant 0 : i32
    %c0_i32_0 = arith.constant 0 : i32
    %c0_i32_1 = arith.constant 0 : i32
    return %c0_i32, %c0_i32_0 : i32, i32
  }
  func.func @transform_9(%arg0: i32, %arg1: i32) -> (i32, i32) {
    %c0_i32 = arith.constant 0 : i32
    %c0_i32_0 = arith.constant 0 : i32
    return %arg0, %c0_i32 : i32, i32
  }
}

</mosaic_0001>

<bundles_post_ra>
// kernel: tpu_custom_call.1
= control target key start
LH: loop header
LB: loop body
LE: loop exit
PB: predicated region body
PF: predicated region fallthrough
CT: control target
= control target key end

     0   :  { %s5528_s0 = inlined_call_operand.hbm [shape: bf16[512,512], index: 0, kind: input, shape index: {}]   ;;  %s5529_s1 = inlined_call_operand.vmem [shape: bf16[512,128], index: 1, kind: input, shape index: {}]   ;;  %s5530_s2 = inlined_call_operand.vmem [shape: f32[512,32], index: 2, kind: input, shape index: {}]   ;;  %s5531_s3 = inlined_call_operand.vmem [shape: f32[128,128], index: 3, kind: input, shape index: {}]   ;;  %s5532_s4 = inlined_call_operand.vmem [shape: f32[32,32], index: 4, kind: input, shape index: {}]   ;;  %s5533_s5 = inlined_call_operand.vmem [shape: f32[1,32], index: 5, kind: input, shape index: {}]   ;;  %s5534_s6 = inlined_call_operand.vmem [shape: f32[1,32], index: 6, kind: input, shape index: {}]   ;;  %s5535_s7 = inlined_call_operand.vmem [shape: f32[128,128], index: 7, kind: input, shape index: {}]   ;;  %s5536_s8 = inlined_call_operand.vmem [shape: f32[32,128], index: 8, kind: input, shape index: {}]   ;;  %s5537_s9 = inlined_call_operand.hbm [shape: bf16[512,128], index: 9, kind: output, shape index: {}]  }
   0x1   :  { %5546 = sst [smem:[#allocation36_spill]] %s5533_s5 }
   0x2   :  { %5547 = sst [smem:[#allocation37_spill]] %s5534_s6 }
   0x3   :  { %5548 = sst [smem:[#allocation38_spill]] %s5535_s7 }
   0x4   :  { %5549 = sst [smem:[#allocation39_spill]] %s5537_s9 }
   0x5   :  { %14 = vsyncpa [#allocation4], 0 }
   0x6   :  { %16 = vsyncpa [#allocation4 + $0x1], 0 }
   0x7   :  { %17 = vsyncpa [#allocation5], 0 }
   0x8   :  { %19 = vsyncpa [#allocation5 + $0x1], 0  ;;  %s4477_s30 = smov 0   ;;  %s4479_s10 = smov 0  }
   0x9   :  { %s4481_s11 = smov 0   ;;  %s4483_s12 = smov 0  }
   0xa   :  { %s4485_s13 = smov 0   ;;  %s4487_s14 = smov 0  }
   0xb   :  { %s4489_s15 = smov 0   ;;  %s4491_s16 = smov 0  }
   0xc   :  { %s4493_s17 = smov 0   ;;  %s4495_s18 = smov 0  }
   0xd   :  { %s4497_s19 = smov 0  }
   0xe LB: > { %5550 = sst [smem:[#allocation9_spill]] %s4397_s14  ;;  %s3047_s20 = sadd.s32 4294967295, %s4417_s19   ;;  %s4417_s19 = sphi %s4497_s19, %s25_s19   ;;  %s4413_s18 = sphi %s4495_s18, %s5624_s18   ;;  %s4409_s17 = sphi %s4493_s17, %s5623_s17   ;;  %s4405_s16 = sphi %s4491_s16, %s5622_s16   ;;  %s4401_s15 = sphi %s4489_s15, %s5621_s15   ;;  %s4397_s14 = sphi %s4487_s14, %s5613_s14   ;;  %s4393_s13 = sphi %s4485_s13, %s5620_s13   ;;  %s4389_s12 = sphi %s4483_s12, %s5619_s12   ;;  %s4385_s11 = sphi %s4481_s11, %s5618_s11   ;;  %s4381_s10 = sphi %s4479_s10, %s5617_s10   ;;  %s4377_s30 = sphi %s4477_s30, %s5616_s30  }
   0xf   : > { %s3048_s21 = sadd.s32 4294967294, %s4417_s19   ;;  %s34_s22 = sadd.s32 1, %s4409_s17 }
  0x10   : > { %s37_s23 = sadd.s32 1, %s4413_s18  ;;  %p35_p0 = scmp.ge.s32.totalorder %s34_s22, 2 }
  0x11   : > { %s46_s24 = sadd.s32 1, %s4397_s14  ;;  %p53_p1 = scmp.ne.s32.totalorder %s4397_s14, %s4393_s13 }
  0x12   : > { %p54_p2 = scmp.eq.s32.totalorder %s4417_s19, 0  ;;  %s5626_s22 = smov (%p35_p0, %s34_s22), 0 }
  0x13   : > { %5551 = sst [smem:[#allocation10_spill]] %s5626_s22  ;;  %s5628_s23 = smov (!%p35_p0, %s37_s23), %s4413_s18 }
  0x14   : > { %s42_s25 = ssub.s32 %s4409_s17, %s5626_s22  ;;  %p4543_p3 = por %p54_p2, %p53_p1 }
  0x15   : > { %p39_p4 = scmp.ge.s32.totalorder %s5628_s23, 2  ;;  %p59_p5 = scmp.ne.s32.totalorder %s4393_s13, %s4389_s12 }
  0x16   : > { %p60_p6 = scmp.eq.s32.totalorder %s3047_s20, 0  ;;  %s245_s27 = sadd.s32 1, %s4385_s11 }
  0x17   : > { %s5630_s23 = smov (%p39_p4, %s5628_s23), 0  ;;  %p255_p8 = scmp.ne.s32.totalorder %s4385_s11, %s4381_s10 }
  0x18   : > { %5553 = sst [smem:[#allocation11_spill]] %s5630_s23  ;;  %p4551_p7 = por %p60_p6, %p59_p5 }
  0x19   : > { %s41_s29 = ssub.s32 %s4413_s18, %s5630_s23  ;;  %p256_p9 = scmp.eq.s32.totalorder %s3047_s20, 3 }
  0x1a   : > { %s43_s22 = sor.u32 %s42_s25, %s41_s29  ;;  %p243_p10 = scmp.eq.s32.totalorder %s41_s29, 0 }
  0x1b   : > { %p44_p11 = scmp.eq.s32.totalorder %s43_s22, 0  ;;  %p4559_p12 = por %p256_p9, %p255_p8 }
  0x1c   : > { %s4564_s9 = scalar_select %p243_p10, %s4385_s11, %s245_s27  }
  0x1d   : > { %s5555_s12 = scalar_select %p4559_p12, 1, 0 }
  0x1e   : > { %s4567_s6 = scalar_select %p44_p11, %s4397_s14, %s46_s24  }
  0x1f   : > { %5556 = sst [smem:[#allocation12_spill]] %s5555_s12  ;;  %p261_p13 = scmp.ne.s32.totalorder %s4381_s10, %s4377_s30 }
  0x20   : > { %5557 = sst [smem:[#allocation13_spill]] %s4567_s6  ;;  %p262_p0 = scmp.eq.s32.totalorder %s3048_s21, 3 }
  0x21   : > { %p4041_p1 = scmp.lt.s32.totalorder %s4417_s19, 4  ;;  %s303_s20 = sand.u32 1, %s4397_s14  }
  0x22   : > { %p4572_p2 = por %p262_p0, %p261_p13  ;;  %s3051_s25 = sshll.u32 %s303_s20, 8 }
  0x23   : > { %s3053_s22 = sshll.u32 %s4409_s17, 1  ;;  %s3216_s29 = sshll.u32 %s4413_s18, 7 }
  0x24   : > { %s5558_s5 = scalar_select %p4572_p2, 1, 0 }
  0x25   : > { %s307_s23 = scalar_lea.vmem [#allocation3], %s3051_s25  ;;  %s314_s12 = sadd.s32 %s3216_s29, %s3053_s22 }
  0x26   : > { %s317_s7 = sshll.u32 %s307_s23, 4  ;;  %s3055_s27 = sshll.u32 %s314_s12, 6  ;;  %s4579_s7 = int_to_ptr.vmem [resolvable:$true] %s317_s7 }
  0x27   : > { %p4583_p4 = pnand %p4041_p1, %p4543_p3  ;;  %s4590_s14 = scalar_lea.hbm %s5528_s0, %s3055_s27 }
  0x28   : > { %s4593_s23 = scalar_lea.sflag [#allocation4], %s303_s20  ;;  %s4265_s12 = scalar_lea.hbm %s4590_s14, 4096 }
  0x29   : > { %p4266_p6 = scmp.ne.s32.totalorder %s4590_s14, %s4265_s12  ;;  %p4267_p3 = pneg %p4583_p4 }
  0x2a   : > { %s4270_s25 = scalar_lea.hbm %s5528_s0, 16384  ;;  %p4271_p10 = scmp.lt.u32.totalorder %s4590_s14, %s5528_s0 }
  0x2b   : > { %p4268_p8 = pnand %p4267_p3, %p4266_p6  ;;  %p4272_p11 = scmp.lt.u32.totalorder %s4270_s25, %s4265_s12 }
  0x2c   : > { %p4274_p0 = scmp.lt.u32.totalorder %s4265_s12, %s4590_s14 }
  0x2d   : > { %p4269_p9 = pneg %p4268_p8  ;;  %p4273_p13 = por %p4272_p11, %p4271_p10 }
  0x2f   : > { %p4275_p1 = por %p4274_p0, %p4273_p13 }
  0x31   : > { %p4276_p5 = pnand %p4275_p1, %p4269_p9 }
  0x33   : > { %4279 = shalt.err (!%p4276_p5)
}
  0x34   : > { %s4280_s20 = scalar_lea.vmem %s4579_s7, 4096  ;;  %s4419_s27 = smov [#allocation3]  }
  0x35   : > { %p4281_p6 = scmp.ne.s32.totalorder %s4579_s7, %s4280_s20  ;;  %s4285_s21 = sshll.u32 %s4419_s27, 4  ;;  %s4286_s21 = int_to_ptr.vmem [resolvable:$false] %s4285_s21 }
  0x36   : > { %s4287_s6 = scalar_lea.vmem %s4286_s21, 8192  ;;  %p4288_p12 = scmp.lt.s32.totalorder %s4579_s7, %s4286_s21 }
  0x37   : > { %p4283_p8 = pnand %p4281_p6, %p4267_p3  ;;  %p4289_p10 = scmp.lt.s32.totalorder %s4287_s6, %s4280_s20 }
  0x39   : > { %p4284_p2 = pneg %p4283_p8  ;;  %p4290_p11 = por %p4289_p10, %p4288_p12 }
  0x3b   : > { %p4291_p13 = pnand %p4290_p11, %p4284_p2 }
  0x3d   : > { %4294 = shalt.err (!%p4291_p13)
}
  0x3e   : > { %s4420_s12 = smov 256   ;;  %s4421_s26 = smov 128  }
  0x3f   : > { %s4422_s25 = smov 8   ;;  %p334_p5 = scmp.lt.s32.totalorder %s4417_s19, 5 }
  0x40   : > { %4036 = dma.hbm_to_vmem [thread:$0]  (!%p4583_p4), %s4590_s14, 4096, %s4579_s7, %s4593_s23, %s4420_s12, %s4421_s26, %s4422_s25  }
  0x41   : > { %p5560_p3 = scmp.ge.s32.totalorder %s4417_s19, 1 }
  0x43   : > { %p335_p9 = pnand %p5560_p3, %p334_p5 }
  0x44   : > { %s340_s22 = sand.u32 (!%p335_p9), 1, %s4393_s13  }
  0x45   : > { %338 = sbr.rel (%p335_p9) target bundleno = 1409 (0x581), region = 56  ;;  %s3057_s29 = sshll.u32 (!%p335_p9), %s340_s22, 8 }
  0x46   : > { %s341_s20 = scalar_lea.sflag (!%p335_p9), [#allocation4], %s340_s22  ;;  %s4625_s27 = scalar_lea.vmem (!%p335_p9), [#allocation3], %s3057_s29 }
  0x4c   : > { %4368 = dma.done.wait (%p4551_p7), %s341_s20, 4096  }
  0x4d   : > { %4370 = vsyncadd (%p4551_p7), %s341_s20, 4294963200  ;;  %s381_s7 = sand.u32 1, %s4381_s10   ;;  %s3059_s14 = sshll.u32 %s4405_s16, 5 }
  0x4e   : > { %s3058_s24 = sshll.u32 %s381_s7, 7  ;;  %p387_p12 = scmp.lt.s32.totalorder %s3059_s14, 63 }
  0x4f   : > { %s4640_s26 = scalar_lea.vmem [#allocation6], %s3058_s24  ;;  %p3061_p2 = scmp.ne.s32.totalorder %s4401_s15, 0 }
  0x50   : > { %s5632_s14 = smov (!%p387_p12, %s3059_s14), 63  ;;  %v4423_v0 = vmov (!%p3061_p2), 0.0  }
  0x51   : > { %s3060_s23 = sshll.u32 %s5632_s14, 3  ;;  %397 = sbr.rel (%p3061_p2) target bundleno = 97 (0x61), region = 64  ;;  %398 = vst [vmem:[#allocation2] sm:$0xff] (!%p3061_p2), %v4423_v0  ;;  %399 = vst [vmem:[#allocation2 + $0x8] sm:$0xff] (!%p3061_p2), %v4423_v0 }
  0x52   : > { %s4638_s12 = scalar_lea.vmem %s5530_s2, %s3060_s23  ;;  %400 = vst [vmem:[#allocation2 + $0x10] sm:$0xff] (!%p3061_p2), %v4423_v0  ;;  %401 = vst [vmem:[#allocation2 + $0x18] sm:$0xff] (!%p3061_p2), %v4423_v0 }
  0x53   : > { %402 = vst [vmem:[#allocation2 + $0x20] sm:$0xff] (!%p3061_p2), %v4423_v0  ;;  %403 = vst [vmem:[#allocation2 + $0x28] sm:$0xff] (!%p3061_p2), %v4423_v0 }
  0x54   : > { %404 = vst [vmem:[#allocation2 + $0x30] sm:$0xff] (!%p3061_p2), %v4423_v0  ;;  %405 = vst [vmem:[#allocation2 + $0x38] sm:$0xff] (!%p3061_p2), %v4423_v0 }
  0x55   : > { %406 = vst [vmem:[#allocation2 + $0x40] sm:$0xff] (!%p3061_p2), %v4423_v0  ;;  %407 = vst [vmem:[#allocation2 + $0x48] sm:$0xff] (!%p3061_p2), %v4423_v0 }
  0x56   : > { %408 = vst [vmem:[#allocation2 + $0x50] sm:$0xff] (!%p3061_p2), %v4423_v0  ;;  %409 = vst [vmem:[#allocation2 + $0x58] sm:$0xff] (!%p3061_p2), %v4423_v0 }
  0x57   : > { %410 = vst [vmem:[#allocation2 + $0x60] sm:$0xff] (!%p3061_p2), %v4423_v0  ;;  %411 = vst [vmem:[#allocation2 + $0x68] sm:$0xff] (!%p3061_p2), %v4423_v0 }
  0x58   : > { %412 = vst [vmem:[#allocation2 + $0x70] sm:$0xff] %v4423_v0  ;;  %413 = vst [vmem:[#allocation2 + $0x78] sm:$0xff] %v4423_v0 }
  0x59   : > { %414 = vst [vmem:[#allocation2 + $0x80] sm:$0xff] %v4423_v0  ;;  %415 = vst [vmem:[#allocation2 + $0x88] sm:$0xff] %v4423_v0 }
  0x5a   : > { %416 = vst [vmem:[#allocation2 + $0x90] sm:$0xff] %v4423_v0  ;;  %417 = vst [vmem:[#allocation2 + $0x98] sm:$0xff] %v4423_v0 }
  0x5b   : > { %418 = vst [vmem:[#allocation2 + $0xa0] sm:$0xff] %v4423_v0  ;;  %419 = vst [vmem:[#allocation2 + $0xa8] sm:$0xff] %v4423_v0 }
  0x5c   : > { %420 = vst [vmem:[#allocation2 + $0xb0] sm:$0xff] %v4423_v0  ;;  %421 = vst [vmem:[#allocation2 + $0xb8] sm:$0xff] %v4423_v0 }
  0x5d   : > { %422 = vst [vmem:[#allocation2 + $0xc0] sm:$0xff] %v4423_v0  ;;  %423 = vst [vmem:[#allocation2 + $0xc8] sm:$0xff] %v4423_v0 }
  0x5e   : > { %424 = vst [vmem:[#allocation2 + $0xd0] sm:$0xff] %v4423_v0  ;;  %425 = vst [vmem:[#allocation2 + $0xd8] sm:$0xff] %v4423_v0 }
  0x5f   : > { %426 = vst [vmem:[#allocation2 + $0xe0] sm:$0xff] %v4423_v0  ;;  %427 = vst [vmem:[#allocation2 + $0xe8] sm:$0xff] %v4423_v0 }
  0x60   : > { %428 = vst [vmem:[#allocation2 + $0xf0] sm:$0xff] %v4423_v0  ;;  %429 = vst [vmem:[#allocation2 + $0xf8] sm:$0xff] %v4423_v0 }
  0x61 PF: > { %s3062_s28 = sshll.u32 %s4401_s15, 8  ;;  %v4155_v1 = vld [vmem:[%s4625_s27 + $0x4] ss:$8 sps:$4 sm:$0xff]   ;;  %v4153_v19 = vld [vmem:[%s4625_s27] ss:$8 sps:$4 sm:$0xff]   ;;  %p3112_p7 = scmp.ne.s32.totalorder %s4401_s15, 1 }
  0x62   : > { %s495_s25 = sshra.s32 %s3062_s28, 3  ;;  %v4158_v2 = vld [vmem:[%s4625_s27 + $0x84] ss:$8 sps:$4 sm:$0xff]   ;;  %819 = vmatprep.mubr.bf16.mxu0 %v4155_v1  ;;  %v4156_v20 = vld [vmem:[%s4625_s27 + $0x80] ss:$8 sps:$4 sm:$0xff]  }
  0x63   : > { %s3063_s22 = sshll.u32 %s495_s25, 2  ;;  %883 = vmatprep.mubr.bf16.mxu1 %v4158_v2  ;;  %v4159_v21 = vld [vmem:[%s4625_s27 + $0x14] ss:$8 sps:$4 sm:$0xff]   ;;  %v4163_v23 = vld [vmem:[%s4625_s27 + $0x10] ss:$8 sps:$4 sm:$0xff]   ;;  %v431_v51 = vld [vmem:[#allocation2] sm:$0xff] }
  0x64   : > { %s4649_s14 = scalar_lea.vmem %s5529_s1, %s3063_s22  ;;  %v4161_v22 = vld [vmem:[%s4625_s27 + $0x94] ss:$8 sps:$4 sm:$0xff]   ;;  %v4164_v24 = vld [vmem:[%s4625_s27 + $0x90] ss:$8 sps:$4 sm:$0xff]   ;;  %v4165_v25 = vld [vmem:[%s4625_s27 + $0x24] ss:$8 sps:$4 sm:$0xff]  }
  0x65   : > { %v4137_v3 = vld [vmem:[%s4649_s14 + $0x40] sm:$0xff]   ;;  %v4139_v5 = vld [vmem:[%s4649_s14 + $0x48] sm:$0xff]   ;;  %v4141_v7 = vld [vmem:[%s4649_s14 + $0x50] sm:$0xff]  }
  0x66   : > { %v4138_v4 = vld [vmem:[%s4649_s14] sm:$0xff]   ;;  %3345 = vmatprep.subr.bf16.mxu0 %v4137_v3  ;;  %3977 = vmatprep.subr.bf16.mxu1 %v4137_v3  ;;  %v4140_v6 = vld [vmem:[%s4649_s14 + $0x8] sm:$0xff]   ;;  %v4142_v8 = vld [vmem:[%s4649_s14 + $0x10] sm:$0xff]  }
  0x67   : > { %3346 = vmatpush3.bf16.msra.mxu0 %v4138_v4  ;;  %3985 = vmatpush3.bf16.msra.mxu1 %v4138_v4  ;;  %v4143_v9 = vld [vmem:[%s4649_s14 + $0x58] sm:$0xff]   ;;  %v4145_v11 = vld [vmem:[%s4649_s14 + $0x60] sm:$0xff]   ;;  %v4147_v13 = vld [vmem:[%s4649_s14 + $0x68] sm:$0xff]  }
  0x68   : > { %3347 = vmatprep.subr.bf16.mxu0 %v4139_v5  ;;  %3978 = vmatprep.subr.bf16.mxu1 %v4139_v5  ;;  %v4144_v10 = vld [vmem:[%s4649_s14 + $0x18] sm:$0xff]   ;;  %v4146_v12 = vld [vmem:[%s4649_s14 + $0x20] sm:$0xff]   ;;  %v4148_v14 = vld [vmem:[%s4649_s14 + $0x28] sm:$0xff]  }
  0x69   : > { %v4149_v15 = vld [vmem:[%s4649_s14 + $0x70] sm:$0xff]   ;;  %v4151_v17 = vld [vmem:[%s4649_s14 + $0x78] sm:$0xff]   ;;  %v4167_v26 = vld [vmem:[%s4625_s27 + $0xa4] ss:$8 sps:$4 sm:$0xff]  }
  0x6a   : > { %v4150_v16 = vld [vmem:[%s4649_s14 + $0x30] sm:$0xff]   ;;  %v4152_v18 = vld [vmem:[%s4649_s14 + $0x38] sm:$0xff]   ;;  %v4169_v27 = vld [vmem:[%s4625_s27 + $0x20] ss:$8 sps:$4 sm:$0xff]  }
  0x6b   : > { %3348 = vmatpush3.bf16.msra.mxu0 %v4140_v6  ;;  %3986 = vmatpush3.bf16.msra.mxu1 %v4140_v6  ;;  %v4170_v28 = vld [vmem:[%s4625_s27 + $0xa0] ss:$8 sps:$4 sm:$0xff]   ;;  %v4171_v29 = vld [vmem:[%s4625_s27 + $0x34] ss:$8 sps:$4 sm:$0xff]   ;;  %v4175_v31 = vld [vmem:[%s4625_s27 + $0x30] ss:$8 sps:$4 sm:$0xff]  }
  0x6c   : > { %3349 = vmatprep.subr.bf16.mxu0 %v4141_v7  ;;  %3979 = vmatprep.subr.bf16.mxu1 %v4141_v7  ;;  %v4173_v30 = vld [vmem:[%s4625_s27 + $0xb4] ss:$8 sps:$4 sm:$0xff]   ;;  %v4176_v32 = vld [vmem:[%s4625_s27 + $0xb0] ss:$8 sps:$4 sm:$0xff]   ;;  %v4177_v33 = vld [vmem:[%s4625_s27 + $0x44] ss:$8 sps:$4 sm:$0xff]  }
  0x6d   : > { %v4179_v34 = vld [vmem:[%s4625_s27 + $0xc4] ss:$8 sps:$4 sm:$0xff]   ;;  %v4181_v35 = vld [vmem:[%s4625_s27 + $0x40] ss:$8 sps:$4 sm:$0xff]   ;;  %v4183_v37 = vld [vmem:[%s4625_s27 + $0x54] ss:$8 sps:$4 sm:$0xff]  }
  0x6e   : > { %v4182_v36 = vld [vmem:[%s4625_s27 + $0xc0] ss:$8 sps:$4 sm:$0xff]   ;;  %v4185_v38 = vld [vmem:[%s4625_s27 + $0xd4] ss:$8 sps:$4 sm:$0xff]   ;;  %v4187_v39 = vld [vmem:[%s4625_s27 + $0x50] ss:$8 sps:$4 sm:$0xff]  }
  0x6f   : > { %3350 = vmatpush3.bf16.msra.mxu0 %v4142_v8  ;;  %3987 = vmatpush3.bf16.msra.mxu1 %v4142_v8  ;;  %v4188_v40 = vld [vmem:[%s4625_s27 + $0xd0] ss:$8 sps:$4 sm:$0xff]   ;;  %v4189_v41 = vld [vmem:[%s4625_s27 + $0x64] ss:$8 sps:$4 sm:$0xff]   ;;  %v4193_v43 = vld [vmem:[%s4625_s27 + $0x60] ss:$8 sps:$4 sm:$0xff]  }
  0x70   : > { %3351 = vmatprep.subr.bf16.mxu0 %v4143_v9  ;;  %3980 = vmatprep.subr.bf16.mxu1 %v4143_v9  ;;  %v4191_v42 = vld [vmem:[%s4625_s27 + $0xe4] ss:$8 sps:$4 sm:$0xff]   ;;  %v4194_v44 = vld [vmem:[%s4625_s27 + $0xe0] ss:$8 sps:$4 sm:$0xff]   ;;  %v4195_v45 = vld [vmem:[%s4625_s27 + $0x74] ss:$8 sps:$4 sm:$0xff]  }
  0x71   : > { %v4197_v46 = vld [vmem:[%s4625_s27 + $0xf4] ss:$8 sps:$4 sm:$0xff]   ;;  %v4199_v47 = vld [vmem:[%s4625_s27 + $0x70] ss:$8 sps:$4 sm:$0xff]   ;;  %v447_v53 = vld [vmem:[#allocation2 + $0x80] sm:$0xff] }
  0x72   : > { %v4200_v48 = vld [vmem:[%s4625_s27 + $0xf0] ss:$8 sps:$4 sm:$0xff]   ;;  %v432_v59 = vld [vmem:[#allocation2 + $0x8] sm:$0xff] }
  0x73   : > { %3352 = vmatpush3.bf16.msra.mxu0 %v4144_v10  ;;  %3988 = vmatpush3.bf16.msra.mxu1 %v4144_v10  ;;  %v448_v61 = vld [vmem:[#allocation2 + $0x88] sm:$0xff]  ;;  %v433_v7 = vld [vmem:[#allocation2 + $0x10] sm:$0xff] }
  0x74   : > { %3353 = vmatprep.subr.bf16.mxu0 %v4145_v11  ;;  %3981 = vmatprep.subr.bf16.mxu1 %v4145_v11  ;;  %v449_v9 = vld [vmem:[#allocation2 + $0x90] sm:$0xff] }
  0x77   : > { %3354 = vmatpush3.bf16.msra.mxu0 %v4146_v12  ;;  %3989 = vmatpush3.bf16.msra.mxu1 %v4146_v12 }
  0x78   : > { %3355 = vmatprep.subr.bf16.mxu0 %v4147_v13  ;;  %3982 = vmatprep.subr.bf16.mxu1 %v4147_v13 }
  0x7b   : > { %3356 = vmatpush3.bf16.msra.mxu0 %v4148_v14  ;;  %3990 = vmatpush3.bf16.msra.mxu1 %v4148_v14 }
  0x7c   : > { %3357 = vmatprep.subr.bf16.mxu0 %v4149_v15  ;;  %3983 = vmatprep.subr.bf16.mxu1 %v4149_v15  ;;  %v434_v15 = vld [vmem:[#allocation2 + $0x18] sm:$0xff] }
  0x7f   : > { %3358 = vmatpush3.bf16.msra.mxu0 %v4150_v16  ;;  %3991 = vmatpush3.bf16.msra.mxu1 %v4150_v16 }
  0x80   : > { %3359 = vmatprep.subr.bf16.mxu0 %v4151_v17  ;;  %3984 = vmatprep.subr.bf16.mxu1 %v4151_v17  ;;  %v450_v17 = vld [vmem:[#allocation2 + $0x98] sm:$0xff] }
  0x83   : > { %3360 = vmatpush3.bf16.msra.mxu0 %v4152_v18  ;;  %3992 = vmatpush3.bf16.msra.mxu1 %v4152_v18 }
  0x86   : > { %820 = vmatmul.mubr.bf16.vlgmr.msra.gmra.mrb[0].mxu0 %v4153_v19  ;;  %884 = vmatmul.mubr.bf16.vlgmr.msra.gmra.mrb[0].mxu1 %v4156_v20 }
  0x87   : > { %827 = vmatprep.mubr.bf16.mxu0 %v4159_v21  ;;  %891 = vmatprep.mubr.bf16.mxu1 %v4161_v22 }
  0x8e   : > { %828 = vmatmul.mubr.bf16.gmra.mrb[4].mxu0 %v4163_v23  ;;  %892 = vmatmul.mubr.bf16.gmra.mrb[4].mxu1 %v4164_v24 }
  0x8f   : > { %835 = vmatprep.mubr.bf16.mxu0 %v4165_v25  ;;  %899 = vmatprep.mubr.bf16.mxu1 %v4167_v26 }
  0x96   : > { %836 = vmatmul.mubr.bf16.gmra.mrb[8].mxu0 %v4169_v27  ;;  %900 = vmatmul.mubr.bf16.gmra.mrb[8].mxu1 %v4170_v28  ;;  %v435_v27 = vld [vmem:[#allocation2 + $0x20] sm:$0xff] }
  0x97   : > { %843 = vmatprep.mubr.bf16.mxu0 %v4171_v29  ;;  %907 = vmatprep.mubr.bf16.mxu1 %v4173_v30  ;;  %v451_v29 = vld [vmem:[#allocation2 + $0xa0] sm:$0xff] }
  0x9e   : > { %844 = vmatmul.mubr.bf16.gmra.mrb[12].mxu0 %v4175_v31  ;;  %908 = vmatmul.mubr.bf16.gmra.mrb[12].mxu1 %v4176_v32 }
  0x9f   : > { %851 = vmatprep.mubr.bf16.mxu0 %v4177_v33  ;;  %915 = vmatprep.mubr.bf16.mxu1 %v4179_v34 }
  0xa6   : > { %852 = vmatmul.mubr.bf16.gmra.mrb[16].mxu0 %v4181_v35  ;;  %916 = vmatmul.mubr.bf16.gmra.mrb[16].mxu1 %v4182_v36  ;;  %v436_v35 = vld [vmem:[#allocation2 + $0x28] sm:$0xff] }
  0xa7   : > { %859 = vmatprep.mubr.bf16.mxu0 %v4183_v37  ;;  %923 = vmatprep.mubr.bf16.mxu1 %v4185_v38  ;;  %v452_v37 = vld [vmem:[#allocation2 + $0xa8] sm:$0xff] }
  0xae   : > { %860 = vmatmul.mubr.bf16.gmra.mrb[20].mxu0 %v4187_v39  ;;  %924 = vmatmul.mubr.bf16.gmra.mrb[20].mxu1 %v4188_v40 }
  0xaf   : > { %867 = vmatprep.mubr.bf16.mxu0 %v4189_v41  ;;  %931 = vmatprep.mubr.bf16.mxu1 %v4191_v42 }
  0xb6   : > { %868 = vmatmul.mubr.bf16.gmra.mrb[24].mxu0 %v4193_v43  ;;  %932 = vmatmul.mubr.bf16.gmra.mrb[24].mxu1 %v4194_v44 }
  0xb7   : > { %875 = vmatprep.mubr.bf16.mxu0 %v4195_v45  ;;  %939 = vmatprep.mubr.bf16.mxu1 %v4197_v46 }
  0xbe   : > { %876 = vmatmul.mubr.bf16.gmra.mrb[28].mxu0 %v4199_v47  ;;  %940 = vmatmul.mubr.bf16.gmra.mrb[28].mxu1 %v4200_v48  ;;  %v437_v47 = vld [vmem:[#allocation2 + $0x30] sm:$0xff] }
 0x159   : > { %v3361_v49 = vpop.f32.mrb[0].mxu0  ;;  %v3409_v50 = vpop.f32.mrb[0].mxu1 }
 0x15a   : > { %v3362_v52 = vpop.f32.mrb[1].mxu0  ;;  %v3410_v54 = vpop.f32.mrb[1].mxu1 }
 0x15b   : > { %v3363_v55 = vadd.f32 %v3362_v52, %v3361_v49  ;;  %v3411_v56 = vadd.f32 %v3410_v54, %v3409_v50  ;;  %v3364_v57 = vpop.f32.mrb[2].mxu0  ;;  %v3412_v58 = vpop.f32.mrb[2].mxu1  ;;  %v453_v49 = vld [vmem:[#allocation2 + $0xb0] sm:$0xff] }
 0x15c   : > { %v3365_v60 = vpop.f32.mrb[3].mxu0  ;;  %v3413_v62 = vpop.f32.mrb[3].mxu1 }
 0x15d   : > { %v948_v63 = vadd.f32 %v3363_v55, %v431_v51  ;;  %v964_v0 = vadd.f32 %v3411_v56, %v447_v53  ;;  %v3366_v1 = vadd.f32 %v3365_v60, %v3364_v57  ;;  %v3414_v2 = vadd.f32 %v3413_v62, %v3412_v58  ;;  %v438_v55 = vld [vmem:[#allocation2 + $0x38] sm:$0xff] }
 0x15e   : > { %v454_v57 = vld [vmem:[#allocation2 + $0xb8] sm:$0xff] }
 0x15f   : > { %980 = vst [vmem:[#allocation2] sm:$0xff] %v948_v63  ;;  %996 = vst [vmem:[#allocation2 + $0x80] sm:$0xff] %v964_v0  ;;  %v949_v3 = vadd.f32 %v3366_v1, %v432_v59  ;;  %v965_v4 = vadd.f32 %v3414_v2, %v448_v61 }
 0x161   : > { %981 = vst [vmem:[#allocation2 + $0x8] sm:$0xff] %v949_v3  ;;  %997 = vst [vmem:[#allocation2 + $0x88] sm:$0xff] %v965_v4  ;;  %v3367_v5 = vpop.f32.mrb[4].mxu0  ;;  %v3415_v6 = vpop.f32.mrb[4].mxu1  ;;  %v439_v3 = vld [vmem:[#allocation2 + $0x40] sm:$0xff] }
 0x162   : > { %v3368_v8 = vpop.f32.mrb[5].mxu0  ;;  %v3416_v10 = vpop.f32.mrb[5].mxu1 }
 0x163   : > { %v3369_v11 = vadd.f32 %v3368_v8, %v3367_v5  ;;  %v3417_v12 = vadd.f32 %v3416_v10, %v3415_v6  ;;  %v3370_v13 = vpop.f32.mrb[6].mxu0  ;;  %v3418_v14 = vpop.f32.mrb[6].mxu1  ;;  %v455_v5 = vld [vmem:[#allocation2 + $0xc0] sm:$0xff] }
 0x164   : > { %v3371_v16 = vpop.f32.mrb[7].mxu0  ;;  %v3419_v18 = vpop.f32.mrb[7].mxu1 }
 0x165   : > { %v950_v19 = vadd.f32 %v3369_v11, %v433_v7  ;;  %v966_v20 = vadd.f32 %v3417_v12, %v449_v9  ;;  %v3372_v21 = vadd.f32 %v3371_v16, %v3370_v13  ;;  %v3420_v22 = vadd.f32 %v3419_v18, %v3418_v14  ;;  %v440_v11 = vld [vmem:[#allocation2 + $0x48] sm:$0xff] }
 0x166   : > { %v456_v13 = vld [vmem:[#allocation2 + $0xc8] sm:$0xff] }
 0x167   : > { %982 = vst [vmem:[#allocation2 + $0x10] sm:$0xff] %v950_v19  ;;  %998 = vst [vmem:[#allocation2 + $0x90] sm:$0xff] %v966_v20  ;;  %v951_v23 = vadd.f32 %v3372_v21, %v434_v15  ;;  %v967_v24 = vadd.f32 %v3420_v22, %v450_v17 }
 0x169   : > { %983 = vst [vmem:[#allocation2 + $0x18] sm:$0xff] %v951_v23  ;;  %999 = vst [vmem:[#allocation2 + $0x98] sm:$0xff] %v967_v24  ;;  %v3373_v25 = vpop.f32.mrb[8].mxu0  ;;  %v3421_v26 = vpop.f32.mrb[8].mxu1  ;;  %v441_v23 = vld [vmem:[#allocation2 + $0x50] sm:$0xff] }
 0x16a   : > { %v3374_v28 = vpop.f32.mrb[9].mxu0  ;;  %v3422_v30 = vpop.f32.mrb[9].mxu1 }
 0x16b   : > { %v3375_v31 = vadd.f32 %v3374_v28, %v3373_v25  ;;  %v3423_v32 = vadd.f32 %v3422_v30, %v3421_v26  ;;  %v3376_v33 = vpop.f32.mrb[10].mxu0  ;;  %v3424_v34 = vpop.f32.mrb[10].mxu1  ;;  %v457_v25 = vld [vmem:[#allocation2 + $0xd0] sm:$0xff] }
 0x16c   : > { %v3377_v36 = vpop.f32.mrb[11].mxu0  ;;  %v3425_v38 = vpop.f32.mrb[11].mxu1 }
 0x16d   : > { %v952_v39 = vadd.f32 %v3375_v31, %v435_v27  ;;  %v968_v40 = vadd.f32 %v3423_v32, %v451_v29  ;;  %v3378_v41 = vadd.f32 %v3377_v36, %v3376_v33  ;;  %v3426_v42 = vadd.f32 %v3425_v38, %v3424_v34  ;;  %v442_v31 = vld [vmem:[#allocation2 + $0x58] sm:$0xff] }
 0x16e   : > { %v458_v33 = vld [vmem:[#allocation2 + $0xd8] sm:$0xff] }
 0x16f   : > { %984 = vst [vmem:[#allocation2 + $0x20] sm:$0xff] %v952_v39  ;;  %1000 = vst [vmem:[#allocation2 + $0xa0] sm:$0xff] %v968_v40  ;;  %v953_v43 = vadd.f32 %v3378_v41, %v436_v35  ;;  %v969_v44 = vadd.f32 %v3426_v42, %v452_v37 }
 0x171   : > { %985 = vst [vmem:[#allocation2 + $0x28] sm:$0xff] %v953_v43  ;;  %1001 = vst [vmem:[#allocation2 + $0xa8] sm:$0xff] %v969_v44  ;;  %v3379_v45 = vpop.f32.mrb[12].mxu0  ;;  %v3427_v46 = vpop.f32.mrb[12].mxu1  ;;  %v443_v43 = vld [vmem:[#allocation2 + $0x60] sm:$0xff] }
 0x172   : > { %v3380_v48 = vpop.f32.mrb[13].mxu0  ;;  %v3428_v50 = vpop.f32.mrb[13].mxu1 }
 0x173   : > { %v3381_v51 = vadd.f32 %v3380_v48, %v3379_v45  ;;  %v3429_v52 = vadd.f32 %v3428_v50, %v3427_v46  ;;  %v3382_v53 = vpop.f32.mrb[14].mxu0  ;;  %v3430_v54 = vpop.f32.mrb[14].mxu1  ;;  %v459_v45 = vld [vmem:[#allocation2 + $0xe0] sm:$0xff] }
 0x174   : > { %v3383_v56 = vpop.f32.mrb[15].mxu0  ;;  %v3431_v58 = vpop.f32.mrb[15].mxu1 }
 0x175   : > { %v954_v59 = vadd.f32 %v3381_v51, %v437_v47  ;;  %v970_v60 = vadd.f32 %v3429_v52, %v453_v49  ;;  %v3384_v61 = vadd.f32 %v3383_v56, %v3382_v53  ;;  %v3432_v62 = vadd.f32 %v3431_v58, %v3430_v54  ;;  %v444_v51 = vld [vmem:[#allocation2 + $0x68] sm:$0xff] }
 0x176   : > { %v460_v53 = vld [vmem:[#allocation2 + $0xe8] sm:$0xff] }
 0x177   : > { %986 = vst [vmem:[#allocation2 + $0x30] sm:$0xff] %v954_v59  ;;  %1002 = vst [vmem:[#allocation2 + $0xb0] sm:$0xff] %v970_v60  ;;  %v955_v63 = vadd.f32 %v3384_v61, %v438_v55  ;;  %v971_v0 = vadd.f32 %v3432_v62, %v454_v57 }
 0x179   : > { %987 = vst [vmem:[#allocation2 + $0x38] sm:$0xff] %v955_v63  ;;  %1003 = vst [vmem:[#allocation2 + $0xb8] sm:$0xff] %v971_v0  ;;  %v3385_v1 = vpop.f32.mrb[16].mxu0  ;;  %v3433_v2 = vpop.f32.mrb[16].mxu1  ;;  %v445_v63 = vld [vmem:[#allocation2 + $0x70] sm:$0xff] }
 0x17a   : > { %v3386_v4 = vpop.f32.mrb[17].mxu0  ;;  %v3434_v6 = vpop.f32.mrb[17].mxu1 }
 0x17b   : > { %v3387_v7 = vadd.f32 %v3386_v4, %v3385_v1  ;;  %v3435_v8 = vadd.f32 %v3434_v6, %v3433_v2  ;;  %v3388_v9 = vpop.f32.mrb[18].mxu0  ;;  %v3436_v10 = vpop.f32.mrb[18].mxu1  ;;  %v461_v1 = vld [vmem:[#allocation2 + $0xf0] sm:$0xff] }
 0x17c   : > { %v3389_v12 = vpop.f32.mrb[19].mxu0  ;;  %v3437_v14 = vpop.f32.mrb[19].mxu1 }
 0x17d   : > { %v956_v15 = vadd.f32 %v3387_v7, %v439_v3  ;;  %v972_v16 = vadd.f32 %v3435_v8, %v455_v5  ;;  %v3390_v17 = vadd.f32 %v3389_v12, %v3388_v9  ;;  %v3438_v18 = vadd.f32 %v3437_v14, %v3436_v10  ;;  %v446_v7 = vld [vmem:[#allocation2 + $0x78] sm:$0xff] }
 0x17e   : > { %v462_v9 = vld [vmem:[#allocation2 + $0xf8] sm:$0xff] }
 0x17f   : > { %988 = vst [vmem:[#allocation2 + $0x40] sm:$0xff] %v956_v15  ;;  %1004 = vst [vmem:[#allocation2 + $0xc0] sm:$0xff] %v972_v16  ;;  %v957_v19 = vadd.f32 %v3390_v17, %v440_v11  ;;  %v973_v20 = vadd.f32 %v3438_v18, %v456_v13 }
 0x181   : > { %989 = vst [vmem:[#allocation2 + $0x48] sm:$0xff] %v957_v19  ;;  %1005 = vst [vmem:[#allocation2 + $0xc8] sm:$0xff] %v973_v20  ;;  %v3391_v21 = vpop.f32.mrb[20].mxu0  ;;  %v3439_v22 = vpop.f32.mrb[20].mxu1 }
 0x182   : > { %v3392_v24 = vpop.f32.mrb[21].mxu0  ;;  %v3440_v26 = vpop.f32.mrb[21].mxu1 }
 0x183   : > { %v3393_v27 = vadd.f32 %v3392_v24, %v3391_v21  ;;  %v3441_v28 = vadd.f32 %v3440_v26, %v3439_v22  ;;  %v3394_v29 = vpop.f32.mrb[22].mxu0  ;;  %v3442_v30 = vpop.f32.mrb[22].mxu1 }
 0x184   : > { %v3395_v32 = vpop.f32.mrb[23].mxu0  ;;  %v3443_v34 = vpop.f32.mrb[23].mxu1 }
 0x185   : > { %v958_v35 = vadd.f32 %v3393_v27, %v441_v23  ;;  %v974_v36 = vadd.f32 %v3441_v28, %v457_v25  ;;  %v3396_v37 = vadd.f32 %v3395_v32, %v3394_v29  ;;  %v3444_v38 = vadd.f32 %v3443_v34, %v3442_v30 }
 0x187   : > { %990 = vst [vmem:[#allocation2 + $0x50] sm:$0xff] %v958_v35  ;;  %1006 = vst [vmem:[#allocation2 + $0xd0] sm:$0xff] %v974_v36  ;;  %v959_v39 = vadd.f32 %v3396_v37, %v442_v31  ;;  %v975_v40 = vadd.f32 %v3444_v38, %v458_v33 }
 0x189   : > { %991 = vst [vmem:[#allocation2 + $0x58] sm:$0xff] %v959_v39  ;;  %1007 = vst [vmem:[#allocation2 + $0xd8] sm:$0xff] %v975_v40  ;;  %v3397_v41 = vpop.f32.mrb[24].mxu0  ;;  %v3445_v42 = vpop.f32.mrb[24].mxu1 }
 0x18a   : > { %v3398_v44 = vpop.f32.mrb[25].mxu0  ;;  %v3446_v46 = vpop.f32.mrb[25].mxu1 }
 0x18b   : > { %v3399_v47 = vadd.f32 %v3398_v44, %v3397_v41  ;;  %v3447_v48 = vadd.f32 %v3446_v46, %v3445_v42  ;;  %v3400_v49 = vpop.f32.mrb[26].mxu0  ;;  %v3448_v50 = vpop.f32.mrb[26].mxu1 }
 0x18c   : > { %v3401_v52 = vpop.f32.mrb[27].mxu0  ;;  %v3449_v54 = vpop.f32.mrb[27].mxu1 }
 0x18d   : > { %v960_v55 = vadd.f32 %v3399_v47, %v443_v43  ;;  %v976_v56 = vadd.f32 %v3447_v48, %v459_v45  ;;  %v3402_v57 = vadd.f32 %v3401_v52, %v3400_v49  ;;  %v3450_v58 = vadd.f32 %v3449_v54, %v3448_v50 }
 0x18f   : > { %992 = vst [vmem:[#allocation2 + $0x60] sm:$0xff] %v960_v55  ;;  %1008 = vst [vmem:[#allocation2 + $0xe0] sm:$0xff] %v976_v56  ;;  %v961_v59 = vadd.f32 %v3402_v57, %v444_v51  ;;  %v977_v60 = vadd.f32 %v3450_v58, %v460_v53 }
 0x191   : > { %993 = vst [vmem:[#allocation2 + $0x68] sm:$0xff] %v961_v59  ;;  %1009 = vst [vmem:[#allocation2 + $0xe8] sm:$0xff] %v977_v60  ;;  %v3403_v61 = vpop.f32.mrb[28].mxu0  ;;  %v3451_v62 = vpop.f32.mrb[28].mxu1 }
 0x192   : > { %v3404_v0 = vpop.f32.mrb[29].mxu0  ;;  %v3452_v2 = vpop.f32.mrb[29].mxu1 }
 0x193   : > { %v3405_v3 = vadd.f32 %v3404_v0, %v3403_v61  ;;  %v3453_v4 = vadd.f32 %v3452_v2, %v3451_v62  ;;  %v3406_v5 = vpop.f32.mrb[30].mxu0  ;;  %v3454_v6 = vpop.f32.mrb[30].mxu1  ;;  %1015 = sbr.rel (%p3112_p7) target bundleno = 1381 (0x565), region = 68 }
 0x194   : > { %v3407_v8 = vpop.f32.mrb[31].mxu0  ;;  %v3455_v10 = vpop.f32.mrb[31].mxu1 }
 0x195   : > { %v962_v11 = vadd.f32 %v3405_v3, %v445_v63  ;;  %v978_v12 = vadd.f32 %v3453_v4, %v461_v1  ;;  %v3408_v13 = vadd.f32 %v3407_v8, %v3406_v5  ;;  %v3456_v14 = vadd.f32 %v3455_v10, %v3454_v6 }
 0x197   : > { %994 = vst [vmem:[#allocation2 + $0x70] sm:$0xff] %v962_v11  ;;  %1010 = vst [vmem:[#allocation2 + $0xf0] sm:$0xff] %v978_v12  ;;  %v963_v15 = vadd.f32 %v3408_v13, %v446_v7  ;;  %v979_v16 = vadd.f32 %v3456_v14, %v462_v9 }
 0x199   : > { %995 = vst [vmem:[#allocation2 + $0x78] sm:$0xff] %v963_v15  ;;  %1011 = vst [vmem:[#allocation2 + $0xf8] sm:$0xff] %v979_v16 }
 0x19a   : > { %v1048_v17 = vld [vmem:[%s5531_s3] sm:$0xff]  ;;  %v1049_v18 = vld [vmem:[%s5531_s3 + $0x8] sm:$0xff]  ;;  %v1050_v19 = vld [vmem:[%s5531_s3 + $0x10] sm:$0xff]  ;;  %vm1357_vm0 = vcmask 261120   ;;  %s5583_s24 = sld [smem:[#allocation38_spill]]  ;;  %s5584_s28 = sld [smem:[#allocation36_spill]] }
 0x19b   : > { %v3897_v20 = vpack.c.bf16 %v1049_v18, %v1048_v17  ;;  %v1051_v21 = vld [vmem:[%s5531_s3 + $0x18] sm:$0xff]  ;;  %v1052_v23 = vld [vmem:[%s5531_s3 + $0x20] sm:$0xff]  ;;  %v1053_v24 = vld [vmem:[%s5531_s3 + $0x28] sm:$0xff]  ;;  %s5585_s15 = sld [smem:[#allocation37_spill]] }
 0x19c   : > { %v3901_v22 = vpack.c.bf16 %v1051_v21, %v1050_v19  ;;  %v3905_v25 = vpack.c.bf16 %v1053_v24, %v1052_v23  ;;  %v1054_v26 = vld [vmem:[%s5531_s3 + $0x30] sm:$0xff]  ;;  %v1016_v27 = vld [vmem:[#allocation2] sm:$0xff]  ;;  %v1055_v28 = vld [vmem:[%s5531_s3 + $0x38] sm:$0xff] }
 0x19d   : > { %3898 = vmatprep.subr.bf16.mxu0 %v3897_v20  ;;  %3657 = vmatprep.mubr.f32.mxu0 %v1016_v27  ;;  %v1353_v29 = vld [vmem:[%s5532_s4] sm:$0xff]  ;;  %v1354_v30 = vld [vmem:[%s5532_s4 + $0x8] sm:$0xff]  ;;  %v3909_v32 = vpack.c.bf16 %v1055_v28, %v1054_v26  ;;  %v1355_v35 = vld [vmem:[%s5532_s4 + $0x10] sm:$0xff] }
 0x19e   : > { %3900 = vmatpush3.bf16.msra.mxu0 %v3897_v20  ;;  %v3929_v31 = vpack.c.bf16 %v1354_v30, %v1353_v29  ;;  %v1056_v33 = vld [vmem:[%s5531_s3 + $0x40] sm:$0xff]  ;;  %v1057_v34 = vld [vmem:[%s5531_s3 + $0x48] sm:$0xff]  ;;  %v1356_v36 = vld [vmem:[%s5532_s4 + $0x18] sm:$0xff] }
 0x19f   : > { %3902 = vmatprep.subr.bf16.mxu0 %v3901_v22  ;;  %v3913_v37 = vpack.c.bf16 %v1057_v34, %v1056_v33  ;;  %v3933_v38 = vpack.c.bf16 %v1356_v36, %v1355_v35  ;;  %v1058_v39 = vld [vmem:[%s5531_s3 + $0x50] sm:$0xff]  ;;  %v1059_v40 = vld [vmem:[%s5531_s3 + $0x58] sm:$0xff]  ;;  %v1060_v42 = vld [vmem:[%s5531_s3 + $0x60] sm:$0xff] }
 0x1a0   : > { %3993 = vmatprep.subr.bf16.mxu1 %v3929_v31  ;;  %v3917_v41 = vpack.c.bf16 %v1059_v40, %v1058_v39  ;;  %v1061_v43 = vld [vmem:[%s5531_s3 + $0x68] sm:$0xff]  ;;  %v1062_v45 = vld [vmem:[%s5531_s3 + $0x70] sm:$0xff]  ;;  %v1063_v46 = vld [vmem:[%s5531_s3 + $0x78] sm:$0xff] }
 0x1a1   : > { %3995 = vmatpush3.bf16.msra.mxu1 %v3929_v31  ;;  %v3921_v44 = vpack.c.bf16 %v1061_v43, %v1060_v42  ;;  %v3925_v47 = vpack.c.bf16 %v1063_v46, %v1062_v45  ;;  %v1347_v48 = vld [vmem:[%s4638_s12 + $0xd0] sm:$0xff]  ;;  %v1348_v49 = vld [vmem:[%s4638_s12 + $0xd8] sm:$0xff]  ;;  %v1349_v50 = vld [vmem:[%s4638_s12 + $0xe0] sm:$0xff] }
 0x1a2   : > { %3904 = vmatpush3.bf16.msra.mxu0 %v3901_v22  ;;  %3994 = vmatprep.subr.bf16.mxu1 %v3933_v38  ;;  %v1350_v51 = vld [vmem:[%s4638_s12 + $0xe8] sm:$0xff]  ;;  %v1351_v52 = vld [vmem:[%s4638_s12 + $0xf0] sm:$0xff]  ;;  %v1352_v55 = vld [vmem:[%s4638_s12 + $0xf8] sm:$0xff] }
 0x1a3   : > { %3906 = vmatprep.subr.bf16.mxu0 %v3905_v25  ;;  %3752 = vmatprep.mubr.msk.f32.mxu1 %vm1357_vm0, %v1347_v48  ;;  %v1017_v53 = vld [vmem:[#allocation2 + $0x8] sm:$0xff]  ;;  %v1018_v54 = vld [vmem:[#allocation2 + $0x10] sm:$0xff]  ;;  %v1019_v56 = vld [vmem:[#allocation2 + $0x18] sm:$0xff] }
 0x1a4   : > { %v1020_v57 = vld [vmem:[#allocation2 + $0x20] sm:$0xff]  ;;  %v1021_v58 = vld [vmem:[#allocation2 + $0x28] sm:$0xff]  ;;  %v1022_v59 = vld [vmem:[#allocation2 + $0x30] sm:$0xff] }
 0x1a5   : > { %3996 = vmatpush3.bf16.msra.mxu1 %v3933_v38  ;;  %v1023_v60 = vld [vmem:[#allocation2 + $0x38] sm:$0xff]  ;;  %v1024_v61 = vld [vmem:[#allocation2 + $0x40] sm:$0xff]  ;;  %v1025_v62 = vld [vmem:[#allocation2 + $0x48] sm:$0xff] }
 0x1a6   : > { %3908 = vmatpush3.bf16.msra.mxu0 %v3905_v25  ;;  %v1026_v63 = vld [vmem:[#allocation2 + $0x50] sm:$0xff]  ;;  %v1027_v0 = vld [vmem:[#allocation2 + $0x58] sm:$0xff]  ;;  %v1028_v1 = vld [vmem:[#allocation2 + $0x60] sm:$0xff] }
 0x1a7   : > { %3910 = vmatprep.subr.bf16.mxu0 %v3909_v32  ;;  %v1029_v2 = vld [vmem:[#allocation2 + $0x68] sm:$0xff]  ;;  %v1030_v3 = vld [vmem:[#allocation2 + $0x70] sm:$0xff]  ;;  %v1031_v4 = vld [vmem:[#allocation2 + $0x78] sm:$0xff] }
 0x1a8   : > { %3753 = vmatmul.mubr.msk.f32.vlgmr.msra.gmra.mrb[0].mxu1 %vm1357_vm0, %v1348_v49  ;;  %v1032_v5 = vld [vmem:[#allocation2 + $0x80] sm:$0xff]  ;;  %v1033_v6 = vld [vmem:[#allocation2 + $0x88] sm:$0xff]  ;;  %v1034_v7 = vld [vmem:[#allocation2 + $0x90] sm:$0xff] }
 0x1a9   : > { %3755 = vmatprep.mubr.msk.f32.mxu1 %vm1357_vm0, %v1349_v50  ;;  %v1035_v8 = vld [vmem:[#allocation2 + $0x98] sm:$0xff]  ;;  %v1036_v9 = vld [vmem:[#allocation2 + $0xa0] sm:$0xff]  ;;  %v1037_v10 = vld [vmem:[#allocation2 + $0xa8] sm:$0xff] }
 0x1aa   : > { %3912 = vmatpush3.bf16.msra.mxu0 %v3909_v32  ;;  %v1038_v11 = vld [vmem:[#allocation2 + $0xb0] sm:$0xff]  ;;  %v1039_v12 = vld [vmem:[#allocation2 + $0xb8] sm:$0xff]  ;;  %v1040_v13 = vld [vmem:[#allocation2 + $0xc0] sm:$0xff] }
 0x1ab   : > { %3914 = vmatprep.subr.bf16.mxu0 %v3913_v37  ;;  %v1041_v14 = vld [vmem:[#allocation2 + $0xc8] sm:$0xff]  ;;  %v1042_v15 = vld [vmem:[#allocation2 + $0xd0] sm:$0xff]  ;;  %v1043_v16 = vld [vmem:[#allocation2 + $0xd8] sm:$0xff] }
 0x1ac   : > { %3756 = vmatmul.mubr.msk.f32.gmra.mrb[2].mxu1 %vm1357_vm0, %v1350_v51  ;;  %v1044_v17 = vld [vmem:[#allocation2 + $0xe0] sm:$0xff]  ;;  %v1045_v18 = vld [vmem:[#allocation2 + $0xe8] sm:$0xff]  ;;  %v1046_v19 = vld [vmem:[#allocation2 + $0xf0] sm:$0xff] }
 0x1ad   : > { %3758 = vmatprep.mubr.msk.f32.mxu1 %vm1357_vm0, %v1351_v52  ;;  %v1047_v20 = vld [vmem:[#allocation2 + $0xf8] sm:$0xff]  ;;  %v1321_v21 = vld [vmem:[%s4638_s12] sm:$0xff]  ;;  %v1322_v22 = vld [vmem:[%s4638_s12 + $0x8] sm:$0xff] }
 0x1ae   : > { %3916 = vmatpush3.bf16.msra.mxu0 %v3913_v37  ;;  %v1323_v23 = vld [vmem:[%s4638_s12 + $0x10] sm:$0xff]  ;;  %v1324_v24 = vld [vmem:[%s4638_s12 + $0x18] sm:$0xff]  ;;  %v1325_v25 = vld [vmem:[%s4638_s12 + $0x20] sm:$0xff] }
 0x1af   : > { %3918 = vmatprep.subr.bf16.mxu0 %v3917_v41  ;;  %v1326_v26 = vld [vmem:[%s4638_s12 + $0x28] sm:$0xff]  ;;  %v1327_v27 = vld [vmem:[%s4638_s12 + $0x30] sm:$0xff]  ;;  %v1328_v28 = vld [vmem:[%s4638_s12 + $0x38] sm:$0xff] }
 0x1b0   : > { %3759 = vmatmul.mubr.msk.f32.gmra.mrb[4].mxu1 %vm1357_vm0, %v1352_v55  ;;  %v1329_v29 = vld [vmem:[%s4638_s12 + $0x40] sm:$0xff]  ;;  %v1330_v30 = vld [vmem:[%s4638_s12 + $0x48] sm:$0xff]  ;;  %v1332_v32 = vld [vmem:[%s4638_s12 + $0x58] sm:$0xff] }
 0x1b1   : > { %v1333_v33 = vld [vmem:[%s4638_s12 + $0x60] sm:$0xff]  ;;  %v1334_v34 = vld [vmem:[%s4638_s12 + $0x68] sm:$0xff]  ;;  %v1335_v35 = vld [vmem:[%s4638_s12 + $0x70] sm:$0xff] }
 0x1b2   : > { %3920 = vmatpush3.bf16.msra.mxu0 %v3917_v41  ;;  %v1336_v36 = vld [vmem:[%s4638_s12 + $0x78] sm:$0xff]  ;;  %v1337_v37 = vld [vmem:[%s4638_s12 + $0x80] sm:$0xff]  ;;  %v1339_v39 = vld [vmem:[%s4638_s12 + $0x90] sm:$0xff] }
 0x1b3   : > { %3922 = vmatprep.subr.bf16.mxu0 %v3921_v44  ;;  %v1340_v40 = vld [vmem:[%s4638_s12 + $0x98] sm:$0xff]  ;;  %v1341_v41 = vld [vmem:[%s4638_s12 + $0xa0] sm:$0xff]  ;;  %v1342_v42 = vld [vmem:[%s4638_s12 + $0xa8] sm:$0xff] }
 0x1b4   : > { %v1343_v43 = vld [vmem:[%s4638_s12 + $0xb0] sm:$0xff]  ;;  %v1345_v45 = vld [vmem:[%s4638_s12 + $0xc0] sm:$0xff]  ;;  %v1346_v46 = vld [vmem:[%s4638_s12 + $0xc8] sm:$0xff] }
 0x1b6   : > { %3924 = vmatpush3.bf16.msra.mxu0 %v3921_v44  ;;  %v1344_v44 = vld [vmem:[%s4638_s12 + $0xb8] sm:$0xff] }
 0x1b7   : > { %3926 = vmatprep.subr.bf16.mxu0 %v3925_v47 }
 0x1ba   : > { %3928 = vmatpush3.bf16.msra.mxu0 %v3925_v47 }
 0x1bb   : > { %3930 = vmatprep.subr.bf16.mxu0 %v3929_v31 }
 0x1bd   : > { %3658 = vmatmul.mubr.f32.vlgmr.msra.gmra.mrb[0].mxu0 %v1017_v53 }
 0x1be   : > { %3932 = vmatpush3.bf16.msra.mxu0 %v3929_v31  ;;  %3660 = vmatprep.mubr.f32.mxu0 %v1018_v54  ;;  %v1331_v31 = vld [vmem:[%s4638_s12 + $0x50] sm:$0xff] }
 0x1bf   : > { %3934 = vmatprep.subr.bf16.mxu0 %v3933_v38 }
 0x1c1   : > { %3661 = vmatmul.mubr.f32.gmra.mrb[2].mxu0 %v1019_v56 }
 0x1c2   : > { %3663 = vmatprep.mubr.f32.mxu0 %v1020_v57  ;;  %3936 = vmatpush3.bf16.msra.mxu0 %v3933_v38  ;;  %v1338_v38 = vld [vmem:[%s4638_s12 + $0x88] sm:$0xff] }
 0x1c5   : > { %3664 = vmatmul.mubr.f32.gmra.mrb[4].mxu0 %v1021_v58 }
 0x1c6   : > { %3666 = vmatprep.mubr.f32.mxu0 %v1022_v59 }
 0x1c9   : > { %3667 = vmatmul.mubr.f32.gmra.mrb[6].mxu0 %v1023_v60 }
 0x1ca   : > { %3669 = vmatprep.mubr.f32.mxu0 %v1024_v61 }
 0x1cd   : > { %3670 = vmatmul.mubr.f32.gmra.mrb[8].mxu0 %v1025_v62 }
 0x1ce   : > { %3672 = vmatprep.mubr.f32.mxu0 %v1026_v63 }
 0x1d1   : > { %3673 = vmatmul.mubr.f32.gmra.mrb[10].mxu0 %v1027_v0 }
 0x1d2   : > { %3675 = vmatprep.mubr.f32.mxu0 %v1028_v1 }
 0x1d5   : > { %3676 = vmatmul.mubr.f32.gmra.mrb[12].mxu0 %v1029_v2 }
 0x1d6   : > { %3678 = vmatprep.mubr.f32.mxu0 %v1030_v3 }
 0x1d9   : > { %3679 = vmatmul.mubr.f32.gmra.mrb[14].mxu0 %v1031_v4 }
 0x1da   : > { %3681 = vmatprep.mubr.f32.mxu0 %v1032_v5 }
 0x1dd   : > { %3682 = vmatmul.mubr.f32.gmra.mrb[16].mxu0 %v1033_v6 }
 0x1de   : > { %3684 = vmatprep.mubr.f32.mxu0 %v1034_v7 }
 0x1e1   : > { %3685 = vmatmul.mubr.f32.gmra.mrb[18].mxu0 %v1035_v8 }
 0x1e2   : > { %3687 = vmatprep.mubr.f32.mxu0 %v1036_v9 }
 0x1e5   : > { %3688 = vmatmul.mubr.f32.gmra.mrb[20].mxu0 %v1037_v10 }
 0x1e6   : > { %3690 = vmatprep.mubr.f32.mxu0 %v1038_v11 }
 0x1e9   : > { %3691 = vmatmul.mubr.f32.gmra.mrb[22].mxu0 %v1039_v12 }
 0x1ea   : > { %3693 = vmatprep.mubr.f32.mxu0 %v1040_v13 }
 0x1ed   : > { %3694 = vmatmul.mubr.f32.gmra.mrb[24].mxu0 %v1041_v14 }
 0x1ee   : > { %3696 = vmatprep.mubr.f32.mxu0 %v1042_v15 }
 0x1f1   : > { %3697 = vmatmul.mubr.f32.gmra.mrb[26].mxu0 %v1043_v16 }
 0x1f2   : > { %3699 = vmatprep.mubr.f32.mxu0 %v1044_v17 }
 0x1f5   : > { %3700 = vmatmul.mubr.f32.gmra.mrb[28].mxu0 %v1045_v18 }
 0x1f6   : > { %3702 = vmatprep.mubr.f32.mxu0 %v1046_v19 }
 0x1f9   : > { %3703 = vmatmul.mubr.f32.gmra.mrb[30].mxu0 %v1047_v20 }
 0x1fa   : > { %3713 = vmatprep.mubr.msk.f32.mxu0 %vm1357_vm0, %v1321_v21 }
 0x1fd   : > { %3714 = vmatmul.mubr.msk.f32.vlgmr.msra.gmra.mrb[32].mxu0 %vm1357_vm0, %v1322_v22 }
 0x1fe   : > { %3716 = vmatprep.mubr.msk.f32.mxu0 %vm1357_vm0, %v1323_v23 }
 0x201   : > { %3717 = vmatmul.mubr.msk.f32.gmra.mrb[34].mxu0 %vm1357_vm0, %v1324_v24 }
 0x202   : > { %3719 = vmatprep.mubr.msk.f32.mxu0 %vm1357_vm0, %v1325_v25 }
 0x205   : > { %3720 = vmatmul.mubr.msk.f32.gmra.mrb[36].mxu0 %vm1357_vm0, %v1326_v26 }
 0x206   : > { %3722 = vmatprep.mubr.msk.f32.mxu0 %vm1357_vm0, %v1327_v27 }
 0x209   : > { %3723 = vmatmul.mubr.msk.f32.gmra.mrb[38].mxu0 %vm1357_vm0, %v1328_v28 }
 0x20a   : > { %3725 = vmatprep.mubr.msk.f32.mxu0 %vm1357_vm0, %v1329_v29 }
 0x20d   : > { %3726 = vmatmul.mubr.msk.f32.gmra.mrb[40].mxu0 %vm1357_vm0, %v1330_v30 }
 0x20e   : > { %3728 = vmatprep.mubr.msk.f32.mxu0 %vm1357_vm0, %v1331_v31 }
 0x211   : > { %3729 = vmatmul.mubr.msk.f32.gmra.mrb[42].mxu0 %vm1357_vm0, %v1332_v32 }
 0x212   : > { %3731 = vmatprep.mubr.msk.f32.mxu0 %vm1357_vm0, %v1333_v33 }
 0x215   : > { %3732 = vmatmul.mubr.msk.f32.gmra.mrb[44].mxu0 %vm1357_vm0, %v1334_v34 }
 0x216   : > { %3734 = vmatprep.mubr.msk.f32.mxu0 %vm1357_vm0, %v1335_v35 }
 0x219   : > { %3735 = vmatmul.mubr.msk.f32.gmra.mrb[46].mxu0 %vm1357_vm0, %v1336_v36 }
 0x21a   : > { %3737 = vmatprep.mubr.msk.f32.mxu0 %vm1357_vm0, %v1337_v37 }
 0x21d   : > { %3738 = vmatmul.mubr.msk.f32.gmra.mrb[48].mxu0 %vm1357_vm0, %v1338_v38 }
 0x21e   : > { %3740 = vmatprep.mubr.msk.f32.mxu0 %vm1357_vm0, %v1339_v39 }
 0x221   : > { %3741 = vmatmul.mubr.msk.f32.gmra.mrb[50].mxu0 %vm1357_vm0, %v1340_v40 }
 0x222   : > { %3743 = vmatprep.mubr.msk.f32.mxu0 %vm1357_vm0, %v1341_v41 }
 0x225   : > { %3744 = vmatmul.mubr.msk.f32.gmra.mrb[52].mxu0 %vm1357_vm0, %v1342_v42 }
 0x226   : > { %3746 = vmatprep.mubr.msk.f32.mxu0 %vm1357_vm0, %v1343_v43 }
 0x229   : > { %3747 = vmatmul.mubr.msk.f32.gmra.mrb[54].mxu0 %vm1357_vm0, %v1344_v44 }
 0x22a   : > { %3749 = vmatprep.mubr.msk.f32.mxu0 %vm1357_vm0, %v1345_v45 }
 0x22d   : > { %3750 = vmatmul.mubr.msk.f32.gmra.mrb[56].mxu0 %vm1357_vm0, %v1346_v46 }
 0x27b   : > { %v4822_v47 = vpop.f32.mrb[0].mxu1 }
 0x27c   : > { %v4824_v48 = vpop.f32.mrb[1].mxu1 }
 0x27f   : > { %v4826_v49 = vpop.f32.mrb[2].mxu1 }
 0x280   : > { %v4828_v50 = vpop.f32.mrb[3].mxu1 }
 0x283   : > { %v4834_v53 = vpop.f32.mrb[4].mxu1 }
 0x284   : > { %v4836_v54 = vpop.f32.mrb[5].mxu1 }
 0x290   : > { %v4830_v51 = vpop.f32.mrb[0].mxu0 }
 0x291   : > { %v4832_v52 = vpop.f32.mrb[1].mxu0 }
 0x294   : > { %v4838_v55 = vpop.f32.mrb[2].mxu0 }
 0x295   : > { %v4840_v56 = vpop.f32.mrb[3].mxu0 }
 0x298   : > { %v4842_v57 = vpop.f32.mrb[4].mxu0 }
 0x299   : > { %v4844_v58 = vpop.f32.mrb[5].mxu0 }
 0x29c   : > { %v4846_v59 = vpop.f32.mrb[6].mxu0 }
 0x29d   : > { %v4848_v60 = vpop.f32.mrb[7].mxu0 }
 0x2a0   : > { %v4850_v61 = vpop.f32.mrb[8].mxu0 }
 0x2a1   : > { %v4852_v62 = vpop.f32.mrb[9].mxu0 }
 0x2a4   : > { %v4854_v63 = vpop.f32.mrb[10].mxu0 }
 0x2a5   : > { %5561 = vst [vmem:[#allocation14_spill] sm:$0xff] %v4854_v63  ;;  %v4856_v0 = vpop.f32.mrb[11].mxu0 }
 0x2a6   : > { %5562 = vst [vmem:[#allocation15_spill] sm:$0xff] %v4856_v0 }
 0x2a8   : > { %v4858_v1 = vpop.f32.mrb[12].mxu0 }
 0x2a9   : > { %5563 = vst [vmem:[#allocation16_spill] sm:$0xff] %v4858_v1  ;;  %v4860_v2 = vpop.f32.mrb[13].mxu0 }
 0x2aa   : > { %5564 = vst [vmem:[#allocation17_spill] sm:$0xff] %v4860_v2 }
 0x2ac   : > { %v4862_v3 = vpop.f32.mrb[14].mxu0 }
 0x2ad   : > { %5565 = vst [vmem:[#allocation18_spill] sm:$0xff] %v4862_v3  ;;  %v4864_v4 = vpop.f32.mrb[15].mxu0 }
 0x2ae   : > { %5566 = vst [vmem:[#allocation19_spill] sm:$0xff] %v4864_v4 }
 0x2b0   : > { %v4866_v5 = vpop.f32.mrb[16].mxu0 }
 0x2b1   : > { %5567 = vst [vmem:[#allocation20_spill] sm:$0xff] %v4866_v5  ;;  %v4868_v6 = vpop.f32.mrb[17].mxu0 }
 0x2b2   : > { %5568 = vst [vmem:[#allocation21_spill] sm:$0xff] %v4868_v6 }
 0x2b4   : > { %v4870_v7 = vpop.f32.mrb[18].mxu0 }
 0x2b5   : > { %5569 = vst [vmem:[#allocation22_spill] sm:$0xff] %v4870_v7  ;;  %v4872_v8 = vpop.f32.mrb[19].mxu0 }
 0x2b6   : > { %5570 = vst [vmem:[#allocation23_spill] sm:$0xff] %v4872_v8 }
 0x2b8   : > { %v4874_v9 = vpop.f32.mrb[20].mxu0 }
 0x2b9   : > { %5571 = vst [vmem:[#allocation24_spill] sm:$0xff] %v4874_v9  ;;  %v4876_v10 = vpop.f32.mrb[21].mxu0 }
 0x2ba   : > { %5572 = vst [vmem:[#allocation25_spill] sm:$0xff] %v4876_v10 }
 0x2bc   : > { %v4878_v11 = vpop.f32.mrb[22].mxu0 }
 0x2bd   : > { %5573 = vst [vmem:[#allocation26_spill] sm:$0xff] %v4878_v11  ;;  %v4880_v12 = vpop.f32.mrb[23].mxu0 }
 0x2be   : > { %5574 = vst [vmem:[#allocation27_spill] sm:$0xff] %v4880_v12 }
 0x2c0   : > { %v4882_v13 = vpop.f32.mrb[24].mxu0 }
 0x2c1   : > { %5575 = vst [vmem:[#allocation28_spill] sm:$0xff] %v4882_v13  ;;  %v4884_v14 = vpop.f32.mrb[25].mxu0 }
 0x2c2   : > { %5576 = vst [vmem:[#allocation29_spill] sm:$0xff] %v4884_v14 }
 0x2c4   : > { %v4886_v15 = vpop.f32.mrb[26].mxu0 }
 0x2c5   : > { %5577 = vst [vmem:[#allocation30_spill] sm:$0xff] %v4886_v15  ;;  %v4888_v16 = vpop.f32.mrb[27].mxu0  ;;  %v1757_v15 = vsel %vm1357_vm0, %v4824_v48, 0.0 }
 0x2c6   : > { %5578 = vst [vmem:[#allocation31_spill] sm:$0xff] %v4888_v16 }
 0x2c8   : > { %v4890_v17 = vpop.f32.mrb[28].mxu0 }
 0x2c9   : > { %5579 = vst [vmem:[#allocation32_spill] sm:$0xff] %v4890_v17  ;;  %v4892_v18 = vpop.f32.mrb[29].mxu0 }
 0x2ca   : > { %5580 = vst [vmem:[#allocation33_spill] sm:$0xff] %v4892_v18 }
 0x2cc   : > { %v4894_v19 = vpop.f32.mrb[30].mxu0 }
 0x2cd   : > { %5581 = vst [vmem:[#allocation34_spill] sm:$0xff] %v4894_v19  ;;  %v4896_v20 = vpop.f32.mrb[31].mxu0 }
 0x2ce   : > { %5582 = vst [vmem:[#allocation35_spill] sm:$0xff] %v4896_v20 }
 0x2d0   : > { %v4898_v21 = vpop.f32.mrb[32].mxu0 }
 0x2d1   : > { %v4900_v22 = vpop.f32.mrb[33].mxu0  ;;  %v1682_v26 = vsel %vm1357_vm0, %v4898_v21, 0.0 }
 0x2d2   : > { %v1679_v23 = vsel %vm1357_vm0, %v4900_v22, 0.0 }
 0x2d3   : > { %1680 = vadd.xlane.f32.xlu0 %v1679_v23 }
 0x2d4   : > { %v4904_v24 = vpop.f32.mrb[34].mxu0 }
 0x2d5   : > { %v4906_v25 = vpop.f32.mrb[35].mxu0  ;;  %v1688_v30 = vsel %vm1357_vm0, %v4904_v24, 0.0 }
 0x2d6   : > { %v1685_v27 = vsel %vm1357_vm0, %v4906_v25, 0.0 }
 0x2d7   : > { %1683 = vadd.xlane.f32.xlu0 %v1682_v26  ;;  %1686 = vadd.xlane.f32.xlu1 %v1685_v27 }
 0x2d8   : > { %v4912_v28 = vpop.f32.mrb[36].mxu0 }
 0x2d9   : > { %v4914_v29 = vpop.f32.mrb[37].mxu0  ;;  %v1694_v34 = vsel %vm1357_vm0, %v4912_v28, 0.0 }
 0x2da   : > { %v1691_v31 = vsel %vm1357_vm0, %v4914_v29, 0.0 }
 0x2db   : > { %1689 = vadd.xlane.f32.xlu1 %v1688_v30  ;;  %1692 = vadd.xlane.f32.xlu0 %v1691_v31 }
 0x2dc   : > { %v4920_v32 = vpop.f32.mrb[38].mxu0 }
 0x2dd   : > { %v4922_v33 = vpop.f32.mrb[39].mxu0  ;;  %v1700_v38 = vsel %vm1357_vm0, %v4920_v32, 0.0 }
 0x2de   : > { %v1697_v35 = vsel %vm1357_vm0, %v4922_v33, 0.0 }
 0x2df   : > { %1695 = vadd.xlane.f32.xlu1 %v1694_v34  ;;  %1698 = vadd.xlane.f32.xlu0 %v1697_v35 }
 0x2e0   : > { %v4928_v36 = vpop.f32.mrb[40].mxu0 }
 0x2e1   : > { %v4930_v37 = vpop.f32.mrb[41].mxu0  ;;  %v1706_v42 = vsel %vm1357_vm0, %v4928_v36, 0.0 }
 0x2e2   : > { %v1703_v39 = vsel %vm1357_vm0, %v4930_v37, 0.0 }
 0x2e3   : > { %1701 = vadd.xlane.f32.xlu1 %v1700_v38  ;;  %1704 = vadd.xlane.f32.xlu0 %v1703_v39 }
 0x2e4   : > { %v4936_v40 = vpop.f32.mrb[42].mxu0 }
 0x2e5   : > { %v4938_v41 = vpop.f32.mrb[43].mxu0  ;;  %v1712_v46 = vsel %vm1357_vm0, %v4936_v40, 0.0 }
 0x2e6   : > { %v1709_v43 = vsel %vm1357_vm0, %v4938_v41, 0.0 }
 0x2e7   : > { %1707 = vadd.xlane.f32.xlu1 %v1706_v42  ;;  %1710 = vadd.xlane.f32.xlu0 %v1709_v43 }
 0x2e8   : > { %v4944_v44 = vpop.f32.mrb[44].mxu0 }
 0x2e9   : > { %v4946_v45 = vpop.f32.mrb[45].mxu0  ;;  %v1718_v30 = vsel %vm1357_vm0, %v4944_v44, 0.0 }
 0x2ea   : > { %v1715_v23 = vsel %vm1357_vm0, %v4946_v45, 0.0 }
 0x2eb   : > { %1713 = vadd.xlane.f32.xlu1 %v1712_v46  ;;  %1716 = vadd.xlane.f32.xlu0 %v1715_v23 }
 0x2ec   : > { %v4952_v26 = vpop.f32.mrb[46].mxu0 }
 0x2ed   : > { %v4954_v27 = vpop.f32.mrb[47].mxu0  ;;  %v1724_v38 = vsel %vm1357_vm0, %v4952_v26, 0.0 }
 0x2ee   : > { %v1721_v31 = vsel %vm1357_vm0, %v4954_v27, 0.0 }
 0x2ef   : > { %1719 = vadd.xlane.f32.xlu1 %v1718_v30  ;;  %1722 = vadd.xlane.f32.xlu0 %v1721_v31 }
 0x2f0   : > { %v4960_v34 = vpop.f32.mrb[48].mxu0 }
 0x2f1   : > { %v4962_v35 = vpop.f32.mrb[49].mxu0  ;;  %v1730_v46 = vsel %vm1357_vm0, %v4960_v34, 0.0 }
 0x2f2   : > { %v1727_v39 = vsel %vm1357_vm0, %v4962_v35, 0.0 }
 0x2f3   : > { %1725 = vadd.xlane.f32.xlu1 %v1724_v38  ;;  %1728 = vadd.xlane.f32.xlu0 %v1727_v39 }
 0x2f4   : > { %v4968_v42 = vpop.f32.mrb[50].mxu0 }
 0x2f5   : > { %v4970_v43 = vpop.f32.mrb[51].mxu0  ;;  %v1736_v38 = vsel %vm1357_vm0, %v4968_v42, 0.0 }
 0x2f6   : > { %v1733_v23 = vsel %vm1357_vm0, %v4970_v43, 0.0 }
 0x2f7   : > { %1731 = vadd.xlane.f32.xlu1 %v1730_v46  ;;  %1734 = vadd.xlane.f32.xlu0 %v1733_v23 }
 0x2f8   : > { %v4976_v30 = vpop.f32.mrb[52].mxu0 }
 0x2f9   : > { %v4978_v31 = vpop.f32.mrb[53].mxu0  ;;  %v1742_v46 = vsel %vm1357_vm0, %v4976_v30, 0.0 }
 0x2fa   : > { %v1739_v39 = vsel %vm1357_vm0, %v4978_v31, 0.0 }
 0x2fb   : > { %1737 = vadd.xlane.f32.xlu1 %v1736_v38  ;;  %1740 = vadd.xlane.f32.xlu0 %v1739_v39 }
 0x2fc   : > { %v4984_v19 = vpop.f32.mrb[54].mxu0 }
 0x2fd   : > { %v4986_v20 = vpop.f32.mrb[55].mxu0  ;;  %v1748_v38 = vsel %vm1357_vm0, %v4984_v19, 0.0 }
 0x2fe   : > { %v1745_v23 = vsel %vm1357_vm0, %v4986_v20, 0.0 }
 0x2ff   : > { %1743 = vadd.xlane.f32.xlu1 %v1742_v46  ;;  %1746 = vadd.xlane.f32.xlu0 %v1745_v23  ;;  %v1763_v46 = vsel %vm1357_vm0, %v4828_v50, 0.0  ;;  %v1760_v23 = vsel %vm1357_vm0, %v4822_v47, 0.0 }
 0x300   : > { %v4992_v17 = vpop.f32.mrb[56].mxu0 }
 0x301   : > { %v4994_v18 = vpop.f32.mrb[57].mxu0  ;;  %v1754_v16 = vsel %vm1357_vm0, %v4992_v17, 0.0 }
 0x302   : > { %v1751_v39 = vsel %vm1357_vm0, %v4994_v18, 0.0 }
 0x303   : > { %1749 = vadd.xlane.f32.xlu1 %v1748_v38  ;;  %1752 = vadd.xlane.f32.xlu0 %v1751_v39  ;;  %v1769_v38 = vsel %vm1357_vm0, %v4836_v54, 0.0  ;;  %v1766_v39 = vsel %vm1357_vm0, %v4826_v49, 0.0 }
 0x307   : > { %1755 = vadd.xlane.f32.xlu1 %v1754_v16  ;;  %1758 = vadd.xlane.f32.xlu0 %v1757_v15  ;;  %v1772_v16 = vsel %vm1357_vm0, %v4834_v53, 0.0 }
 0x30b   : > { %1761 = vadd.xlane.f32.xlu1 %v1760_v23  ;;  %1764 = vadd.xlane.f32.xlu0 %v1763_v46 }
 0x30f   : > { %1767 = vadd.xlane.f32.xlu1 %v1766_v39  ;;  %1770 = vadd.xlane.f32.xlu0 %v1769_v38 }
 0x313   : > { %1773 = vadd.xlane.f32.xlu1 %v1772_v16 }
 0x360   : > { %v1681_v15 = vpop.xlane.xlu0 %1680 }
 0x361   : > { %v1776_v13 = vmul.f32 0.03125, %v1681_v15 }
 0x363   : > { %v5015_v14 = vsub.f32 %v4900_v22, %v1776_v13 }
 0x364   : > { %v1684_v11 = vpop.xlane.xlu0 %1683  ;;  %v1687_v23 = vpop.xlane.xlu1 %1686 }
 0x365   : > { %v1777_v46 = vmul.f32 0.03125, %v1684_v11  ;;  %v1778_v12 = vmul.f32 0.03125, %v1687_v23  ;;  %v1840_v9 = vmul.f32 %v5015_v14, %v5015_v14 }
 0x367   : > { %v5020_v10 = vsub.f32 %v4898_v21, %v1777_v46  ;;  %v5023_v38 = vsub.f32 %v4906_v25, %v1778_v12  ;;  %v1872_v39 = vsel %vm1357_vm0, %v1840_v9, 0.0 }
 0x368   : > { %v1690_v16 = vpop.xlane.xlu1 %1689  ;;  %v1693_v15 = vpop.xlane.xlu0 %1692  ;;  %1873 = vadd.xlane.f32.xlu0 %v1872_v39 }
 0x369   : > { %v1779_v13 = vmul.f32 0.03125, %v1690_v16  ;;  %v1780_v22 = vmul.f32 0.03125, %v1693_v15  ;;  %v1841_v11 = vmul.f32 %v5020_v10, %v5020_v10  ;;  %v1842_v23 = vmul.f32 %v5023_v38, %v5023_v38 }
 0x36b   : > { %v5031_v7 = vsub.f32 %v4904_v24, %v1779_v13  ;;  %v5034_v21 = vsub.f32 %v4914_v29, %v1780_v22  ;;  %v1875_v12 = vsel %vm1357_vm0, %v1841_v11, 0.0  ;;  %v1878_v9 = vsel %vm1357_vm0, %v1842_v23, 0.0 }
 0x36c   : > { %v1696_v25 = vpop.xlane.xlu1 %1695  ;;  %v1699_v46 = vpop.xlane.xlu0 %1698  ;;  %1876 = vadd.xlane.f32.xlu1 %v1875_v12  ;;  %1879 = vadd.xlane.f32.xlu0 %v1878_v9 }
 0x36d   : > { %v1781_v39 = vmul.f32 0.03125, %v1696_v25  ;;  %v1782_v16 = vmul.f32 0.03125, %v1699_v46  ;;  %v1843_v15 = vmul.f32 %v5031_v7, %v5031_v7  ;;  %v1844_v24 = vmul.f32 %v5034_v21, %v5034_v21 }
 0x36f   : > { %v5043_v13 = vsub.f32 %v4912_v28, %v1781_v39  ;;  %v5046_v29 = vsub.f32 %v4922_v33, %v1782_v16  ;;  %v1881_v22 = vsel %vm1357_vm0, %v1843_v15, 0.0  ;;  %v1884_v11 = vsel %vm1357_vm0, %v1844_v24, 0.0 }
 0x370   : > { %v1702_v23 = vpop.xlane.xlu1 %1701  ;;  %v1705_v12 = vpop.xlane.xlu0 %1704  ;;  %1882 = vadd.xlane.f32.xlu1 %v1881_v22  ;;  %1885 = vadd.xlane.f32.xlu0 %v1884_v11 }
 0x371   : > { %v1783_v9 = vmul.f32 0.03125, %v1702_v23  ;;  %v1784_v25 = vmul.f32 0.03125, %v1705_v12  ;;  %v1845_v46 = vmul.f32 %v5043_v13, %v5043_v13  ;;  %v1846_v28 = vmul.f32 %v5046_v29, %v5046_v29 }
 0x373   : > { %v5055_v39 = vsub.f32 %v4920_v32, %v1783_v9  ;;  %v5058_v33 = vsub.f32 %v4930_v37, %v1784_v25  ;;  %v1887_v16 = vsel %vm1357_vm0, %v1845_v46, 0.0  ;;  %v1890_v15 = vsel %vm1357_vm0, %v1846_v28, 0.0 }
 0x374   : > { %v1708_v24 = vpop.xlane.xlu1 %1707  ;;  %v1711_v22 = vpop.xlane.xlu0 %1710  ;;  %1888 = vadd.xlane.f32.xlu1 %v1887_v16  ;;  %1891 = vadd.xlane.f32.xlu0 %v1890_v15 }
 0x375   : > { %v1785_v11 = vmul.f32 0.03125, %v1708_v24  ;;  %v1786_v23 = vmul.f32 0.03125, %v1711_v22  ;;  %v1847_v12 = vmul.f32 %v5055_v39, %v5055_v39  ;;  %v1848_v32 = vmul.f32 %v5058_v33, %v5058_v33 }
 0x377   : > { %v5067_v9 = vsub.f32 %v4928_v36, %v1785_v11  ;;  %v5070_v37 = vsub.f32 %v4938_v41, %v1786_v23  ;;  %v1893_v25 = vsel %vm1357_vm0, %v1847_v12, 0.0  ;;  %v1896_v46 = vsel %vm1357_vm0, %v1848_v32, 0.0 }
 0x378   : > { %v1714_v28 = vpop.xlane.xlu1 %1713  ;;  %v1717_v16 = vpop.xlane.xlu0 %1716  ;;  %1894 = vadd.xlane.f32.xlu1 %v1893_v25  ;;  %1897 = vadd.xlane.f32.xlu0 %v1896_v46 }
 0x379   : > { %v1787_v15 = vmul.f32 0.03125, %v1714_v28  ;;  %v1788_v24 = vmul.f32 0.03125, %v1717_v16  ;;  %v1849_v22 = vmul.f32 %v5067_v9, %v5067_v9  ;;  %v1850_v36 = vmul.f32 %v5070_v37, %v5070_v37 }
 0x37b   : > { %v5079_v11 = vsub.f32 %v4936_v40, %v1787_v15  ;;  %v5082_v41 = vsub.f32 %v4946_v45, %v1788_v24  ;;  %v1899_v23 = vsel %vm1357_vm0, %v1849_v22, 0.0  ;;  %v1902_v12 = vsel %vm1357_vm0, %v1850_v36, 0.0 }
 0x37c   : > { %v1720_v32 = vpop.xlane.xlu1 %1719  ;;  %v1723_v25 = vpop.xlane.xlu0 %1722  ;;  %1900 = vadd.xlane.f32.xlu1 %v1899_v23  ;;  %1903 = vadd.xlane.f32.xlu0 %v1902_v12 }
 0x37d   : > { %v1789_v46 = vmul.f32 0.03125, %v1720_v32  ;;  %v1790_v28 = vmul.f32 0.03125, %v1723_v25  ;;  %v1851_v16 = vmul.f32 %v5079_v11, %v5079_v11  ;;  %v1852_v40 = vmul.f32 %v5082_v41, %v5082_v41 }
 0x37f   : > { %v5091_v15 = vsub.f32 %v4944_v44, %v1789_v46  ;;  %v5094_v45 = vsub.f32 %v4954_v27, %v1790_v28  ;;  %v1905_v24 = vsel %vm1357_vm0, %v1851_v16, 0.0  ;;  %v1908_v22 = vsel %vm1357_vm0, %v1852_v40, 0.0 }
 0x380   : > { %v1726_v36 = vpop.xlane.xlu1 %1725  ;;  %v1729_v23 = vpop.xlane.xlu0 %1728  ;;  %1906 = vadd.xlane.f32.xlu1 %v1905_v24  ;;  %1909 = vadd.xlane.f32.xlu0 %v1908_v22 }
 0x381   : > { %v1791_v12 = vmul.f32 0.03125, %v1726_v36  ;;  %v1792_v32 = vmul.f32 0.03125, %v1729_v23  ;;  %v1853_v25 = vmul.f32 %v5091_v15, %v5091_v15  ;;  %v1854_v44 = vmul.f32 %v5094_v45, %v5094_v45 }
 0x383   : > { %v5103_v46 = vsub.f32 %v4952_v26, %v1791_v12  ;;  %v5106_v27 = vsub.f32 %v4962_v35, %v1792_v32  ;;  %v1911_v28 = vsel %vm1357_vm0, %v1853_v25, 0.0  ;;  %v1914_v16 = vsel %vm1357_vm0, %v1854_v44, 0.0  ;;  %v2222_v44 = vld [vmem:[%s5536_s8] sm:$0xff] }
 0x384   : > { %v1732_v40 = vpop.xlane.xlu1 %1731  ;;  %v1735_v24 = vpop.xlane.xlu0 %1734  ;;  %1912 = vadd.xlane.f32.xlu1 %v1911_v28  ;;  %1915 = vadd.xlane.f32.xlu0 %v1914_v16  ;;  %v2223_v28 = vld [vmem:[%s5536_s8 + $0x8] sm:$0xff] }
 0x385   : > { %v1793_v22 = vmul.f32 0.03125, %v1732_v40  ;;  %v1794_v36 = vmul.f32 0.03125, %v1735_v24  ;;  %v1855_v23 = vmul.f32 %v5103_v46, %v5103_v46  ;;  %v1856_v26 = vmul.f32 %v5106_v27, %v5106_v27 }
 0x387   : > { %v5115_v12 = vsub.f32 %v4960_v34, %v1793_v22  ;;  %v5118_v35 = vsub.f32 %v4970_v43, %v1794_v36  ;;  %v1917_v32 = vsel %vm1357_vm0, %v1855_v23, 0.0  ;;  %v1920_v25 = vsel %vm1357_vm0, %v1856_v26, 0.0 }
 0x388   : > { %v1738_v16 = vpop.xlane.xlu1 %1737  ;;  %v1741_v40 = vpop.xlane.xlu0 %1740  ;;  %1918 = vadd.xlane.f32.xlu1 %v1917_v32  ;;  %1921 = vadd.xlane.f32.xlu0 %v1920_v25  ;;  %v3937_v34 = vpack.c.bf16 %v2223_v28, %v2222_v44  ;;  %v2224_v25 = vld [vmem:[%s5536_s8 + $0x10] sm:$0xff]  ;;  %v2225_v44 = vld [vmem:[%s5536_s8 + $0x18] sm:$0xff] }
 0x389   : > { %v1795_v24 = vmul.f32 0.03125, %v1738_v16  ;;  %v1796_v43 = vmul.f32 0.03125, %v1741_v40  ;;  %v1857_v22 = vmul.f32 %v5115_v12, %v5115_v12  ;;  %v1858_v36 = vmul.f32 %v5118_v35, %v5118_v35 }
 0x38a   : > { %3938 = vmatprep.subr.bf16.mxu1 %v3937_v34 }
 0x38b   : > { %v5133_v23 = vsub.f32 %v4968_v42, %v1795_v24  ;;  %v5136_v26 = vsub.f32 %v4978_v31, %v1796_v43  ;;  %v1923_v8 = vsel %vm1357_vm0, %v1857_v22, 0.0  ;;  %v1926_v32 = vsel %vm1357_vm0, %v1858_v36, 0.0  ;;  %3940 = vmatpush3.bf16.msra.mxu1 %v3937_v34 }
 0x38c   : > { %v1744_v28 = vpop.xlane.xlu1 %1743  ;;  %v1747_v16 = vpop.xlane.xlu0 %1746  ;;  %1924 = vadd.xlane.f32.xlu1 %v1923_v8  ;;  %1927 = vadd.xlane.f32.xlu0 %v1926_v32  ;;  %v3941_v42 = vpack.c.bf16 %v2225_v44, %v2224_v25 }
 0x38d   : > { %v1797_v31 = vmul.f32 0.03125, %v1744_v28  ;;  %v1798_v40 = vmul.f32 0.03125, %v1747_v16  ;;  %v1859_v24 = vmul.f32 %v5133_v23, %v5133_v23  ;;  %v1860_v34 = vmul.f32 %v5136_v26, %v5136_v26 }
 0x38e   : > { %3942 = vmatprep.subr.bf16.mxu1 %v3941_v42 }
 0x38f   : > { %v5151_v43 = vsub.f32 %v4976_v30, %v1797_v31  ;;  %v5154_v22 = vsub.f32 %v4986_v20, %v1798_v40  ;;  %v1929_v36 = vsel %vm1357_vm0, %v1859_v24, 0.0  ;;  %v1932_v8 = vsel %vm1357_vm0, %v1860_v34, 0.0  ;;  %3944 = vmatpush3.bf16.msra.mxu1 %v3941_v42  ;;  %v2206_v24 = vld [vmem:[%s5583_s24] sm:$0xff]  ;;  %v2207_v34 = vld [vmem:[%s5583_s24 + $0x8] sm:$0xff] }
 0x390   : > { %v1750_v32 = vpop.xlane.xlu1 %1749  ;;  %1930 = vadd.xlane.f32.xlu1 %v1929_v36  ;;  %1933 = vadd.xlane.f32.xlu0 %v1932_v8  ;;  %v1753_v25 = vpop.xlane.xlu0 %1752  ;;  %v5176_v8 = vpack.c.bf16 %v2207_v34, %v2206_v24 }
 0x391   : > { %v1799_v44 = vmul.f32 0.03125, %v1750_v32  ;;  %v1800_v28 = vmul.f32 0.03125, %v1753_v25  ;;  %v1861_v16 = vmul.f32 %v5151_v43, %v5151_v43  ;;  %v1862_v30 = vmul.f32 %v5154_v22, %v5154_v22 }
 0x392   : > { %3946 = vmatprep.subr.bf16.mxu1 %v5176_v8 }
 0x393   : > { %v5163_v20 = vsub.f32 %v4984_v19, %v1799_v44  ;;  %v5166_v31 = vsub.f32 %v4994_v18, %v1800_v28  ;;  %v1935_v42 = vsel %vm1357_vm0, %v1861_v16, 0.0  ;;  %v1938_v40 = vsel %vm1357_vm0, %v1862_v30, 0.0 }
 0x394   : > { %1936 = vadd.xlane.f32.xlu1 %v1935_v42  ;;  %v1756_v36 = vpop.xlane.xlu1 %1755  ;;  %1939 = vadd.xlane.f32.xlu0 %v1938_v40  ;;  %v1759_v19 = vpop.xlane.xlu0 %1758 }
 0x395   : > { %v1801_v18 = vmul.f32 0.03125, %v1756_v36  ;;  %v1802_v32 = vmul.f32 0.03125, %v1759_v19  ;;  %v1863_v25 = vmul.f32 %v5163_v20, %v5163_v20  ;;  %v1864_v44 = vmul.f32 %v5166_v31, %v5166_v31 }
 0x397   : > { %v5184_v28 = vsub.f32 %v4992_v17, %v1801_v18  ;;  %v5187_v16 = vsub.f32 %v4824_v48, %v1802_v32  ;;  %v1941_v30 = vsel %vm1357_vm0, %v1863_v25, 0.0  ;;  %v1944_v42 = vsel %vm1357_vm0, %v1864_v44, 0.0 }
 0x398   : > { %1942 = vadd.xlane.f32.xlu1 %v1941_v30  ;;  %v1762_v40 = vpop.xlane.xlu1 %1761  ;;  %1945 = vadd.xlane.f32.xlu0 %v1944_v42  ;;  %v1765_v24 = vpop.xlane.xlu0 %1764 }
 0x399   : > { %v1803_v34 = vmul.f32 0.03125, %v1762_v40  ;;  %v1804_v36 = vmul.f32 0.03125, %v1765_v24  ;;  %v1865_v19 = vmul.f32 %v5184_v28, %v5184_v28  ;;  %v1866_v17 = vmul.f32 %v5187_v16, %v5187_v16 }
 0x39b   : > { %v5196_v18 = vsub.f32 %v4822_v47, %v1803_v34  ;;  %v5199_v48 = vsub.f32 %v4828_v50, %v1804_v36  ;;  %v1947_v32 = vsel %vm1357_vm0, %v1865_v19, 0.0  ;;  %v1950_v25 = vsel %vm1357_vm0, %v1866_v17, 0.0 }
 0x39c   : > { %1948 = vadd.xlane.f32.xlu1 %v1947_v32  ;;  %v1768_v44 = vpop.xlane.xlu1 %1767  ;;  %1951 = vadd.xlane.f32.xlu0 %v1950_v25  ;;  %v1771_v30 = vpop.xlane.xlu0 %1770 }
 0x39d   : > { %v1805_v42 = vmul.f32 0.03125, %v1768_v44  ;;  %v1806_v40 = vmul.f32 0.03125, %v1771_v30  ;;  %v1867_v24 = vmul.f32 %v5196_v18, %v5196_v18  ;;  %v1868_v47 = vmul.f32 %v5199_v48, %v5199_v48 }
 0x39f   : > { %v5208_v34 = vsub.f32 %v4826_v49, %v1805_v42  ;;  %v5211_v50 = vsub.f32 %v4836_v54, %v1806_v40  ;;  %v1953_v36 = vsel %vm1357_vm0, %v1867_v24, 0.0  ;;  %v1956_v19 = vsel %vm1357_vm0, %v1868_v47, 0.0 }
 0x3a0   : > { %1954 = vadd.xlane.f32.xlu1 %v1953_v36  ;;  %v1774_v17 = vpop.xlane.xlu1 %1773  ;;  %1957 = vadd.xlane.f32.xlu0 %v1956_v19 }
 0x3a1   : > { %v1807_v32 = vmul.f32 0.03125, %v1774_v17  ;;  %v1869_v25 = vmul.f32 %v5208_v34, %v5208_v34  ;;  %v1870_v44 = vmul.f32 %v5211_v50, %v5211_v50 }
 0x3a3   : > { %v5220_v49 = vsub.f32 %v4834_v53, %v1807_v32  ;;  %v1959_v54 = vsel %vm1357_vm0, %v1869_v25, 0.0  ;;  %v1962_v30 = vsel %vm1357_vm0, %v1870_v44, 0.0 }
 0x3a4   : > { %1960 = vadd.xlane.f32.xlu1 %v1959_v54  ;;  %1963 = vadd.xlane.f32.xlu0 %v1962_v30 }
 0x3a5   : > { %v1871_v42 = vmul.f32 %v5220_v49, %v5220_v49 }
 0x3a7   : > { %v1965_v40 = vsel %vm1357_vm0, %v1871_v42, 0.0 }
 0x3a8   : > { %1966 = vadd.xlane.f32.xlu1 %v1965_v40 }
 0x3f5   : > { %v1874_v24 = vpop.xlane.xlu0 %1873 }
 0x3f6   : > { %v1968_v47 = vmul.f32 0.03125, %v1874_v24 }
 0x3f8   : > { %v2000_v36 = vadd.f32 1e-05, %v1968_v47 }
 0x3f9   : > { %v1877_v19 = vpop.xlane.xlu1 %1876  ;;  %v1880_v17 = vpop.xlane.xlu0 %1879 }
 0x3fa   : > { %4201 = vrsqrt.f32 %v2000_v36  ;;  %v1969_v53 = vmul.f32 0.03125, %v1877_v19  ;;  %v1970_v32 = vmul.f32 0.03125, %v1880_v17  ;;  %v5230_v36 = vld [vmem:[%s5584_s28] ss:$0 sm:$0xff] }
 0x3fc   : > { %v2001_v5 = vadd.f32 1e-05, %v1969_v53  ;;  %v2002_v25 = vadd.f32 1e-05, %v1970_v32  ;;  %v5236_v32 = vld [vmem:[%s5585_s15] ss:$0 sm:$0xff] }
 0x3fd   : > { %v1883_v6 = vpop.xlane.xlu1 %1882  ;;  %v1886_v44 = vpop.xlane.xlu0 %1885 }
 0x3fe   : > { %4203 = vrsqrt.f32 %v2001_v5  ;;  %v1971_v54 = vmul.f32 0.03125, %v1883_v6  ;;  %v1972_v30 = vmul.f32 0.03125, %v1886_v44 }
 0x3ff   : > { %4205 = vrsqrt.f32 %v2002_v25 }
 0x400   : > { %v2003_v3 = vadd.f32 1e-05, %v1971_v54  ;;  %v2004_v4 = vadd.f32 1e-05, %v1972_v30 }
 0x401   : > { %v1889_v42 = vpop.xlane.xlu1 %1888  ;;  %v1892_v40 = vpop.xlane.xlu0 %1891 }
 0x402   : > { %4207 = vrsqrt.f32 %v2003_v3  ;;  %v1973_v24 = vmul.f32 0.03125, %v1889_v42  ;;  %v1974_v47 = vmul.f32 0.03125, %v1892_v40 }
 0x403   : > { %4209 = vrsqrt.f32 %v2004_v4 }
 0x404   : > { %v4202_v1 = vpop.eup %4201  ;;  %v2005_v19 = vadd.f32 1e-05, %v1973_v24  ;;  %v2006_v17 = vadd.f32 1e-05, %v1974_v47 }
 0x405   : > { %v1895_v5 = vpop.xlane.xlu1 %1894  ;;  %v1898_v6 = vpop.xlane.xlu0 %1897  ;;  %v2064_v53 = vmul.f32 %v4202_v1, %v5015_v14 }
 0x406   : > { %4211 = vrsqrt.f32 %v2005_v19  ;;  %v1975_v3 = vmul.f32 0.03125, %v1895_v5  ;;  %v1976_v4 = vmul.f32 0.03125, %v1898_v6  ;;  %v2209_v5 = vld [vmem:[%s5583_s24 + $0x18] sm:$0xff] }
 0x407   : > { %4213 = vrsqrt.f32 %v2006_v17  ;;  %v2103_v25 = vmul.f32 %v5230_v36, %v2064_v53  ;;  %v2208_v17 = vld [vmem:[%s5583_s24 + $0x10] sm:$0xff] }
 0x408   : > { %v4204_v44 = vpop.eup %4203  ;;  %v2007_v54 = vadd.f32 1e-05, %v1975_v3  ;;  %v2008_v30 = vadd.f32 1e-05, %v1976_v4 }
 0x409   : > { %v4206_v42 = vpop.eup %4205  ;;  %v2065_v40 = vmul.f32 %v4204_v44, %v5020_v10  ;;  %v1901_v24 = vpop.xlane.xlu1 %1900  ;;  %v2142_v1 = vadd.f32 %v5236_v32, %v2103_v25 }
 0x40a   : > { %v1904_v47 = vpop.xlane.xlu0 %1903  ;;  %4215 = vrsqrt.f32 %v2007_v54  ;;  %v1977_v14 = vmul.f32 0.03125, %v1901_v24  ;;  %v2066_v19 = vmul.f32 %v4206_v42, %v5023_v38 }
 0x40b   : > { %v1978_v2 = vmul.f32 0.03125, %v1904_v47  ;;  %v2104_v6 = vmul.f32 %v5230_v36, %v2065_v40  ;;  %4217 = vrsqrt.f32 %v2008_v30  ;;  %v2174_v10 = vmax.f32 %v2142_v1, 0.0  ;;  %v2211_v1 = vld [vmem:[%s5583_s24 + $0x28] sm:$0xff] }
 0x40c   : > { %v4208_v53 = vpop.eup %4207  ;;  %v2009_v3 = vadd.f32 1e-05, %v1977_v14  ;;  %v2105_v25 = vmul.f32 %v5230_v36, %v2066_v19  ;;  %v3949_v47 = vpack.c.bf16 %v2209_v5, %v2208_v17 }
 0x40d   : > { %v2010_v4 = vadd.f32 1e-05, %v1978_v2  ;;  %v4210_v44 = vpop.eup %4209  ;;  %v2143_v38 = vadd.f32 %v5236_v32, %v2104_v6  ;;  %v1907_v54 = vpop.xlane.xlu1 %1906  ;;  %3769 = vmatprep.mubr.msk.f32.mxu1 %vm1357_vm0, %v2174_v10  ;;  %v2067_v24 = vmul.f32 %v4208_v53, %v5031_v7  ;;  %v2210_v2 = vld [vmem:[%s5583_s24 + $0x20] sm:$0xff] }
 0x40e   : > { %v1910_v42 = vpop.xlane.xlu0 %1909  ;;  %4219 = vrsqrt.f32 %v2009_v3  ;;  %v1979_v63 = vmul.f32 0.03125, %v1907_v54  ;;  %v2144_v30 = vadd.f32 %v5236_v32, %v2105_v25  ;;  %v2068_v7 = vmul.f32 %v4210_v44, %v5034_v21  ;;  %v2212_v21 = vld [vmem:[%s5583_s24 + $0x30] sm:$0xff]  ;;  %v2213_v44 = vld [vmem:[%s5583_s24 + $0x38] sm:$0xff] }
 0x40f   : > { %v1980_v40 = vmul.f32 0.03125, %v1910_v42  ;;  %v2175_v14 = vmax.f32 %v2143_v38, 0.0  ;;  %4221 = vrsqrt.f32 %v2010_v4  ;;  %v2106_v19 = vmul.f32 %v5230_v36, %v2067_v24 }
 0x410   : > { %v4212_v17 = vpop.eup %4211  ;;  %v2011_v5 = vadd.f32 1e-05, %v1979_v63  ;;  %v2176_v10 = vmax.f32 %v2144_v30, 0.0  ;;  %v2107_v42 = vmul.f32 %v5230_v36, %v2068_v7  ;;  %v3953_v4 = vpack.c.bf16 %v2211_v1, %v2210_v2 }
 0x411   : > { %v2012_v6 = vadd.f32 1e-05, %v1980_v40  ;;  %v4214_v53 = vpop.eup %4213  ;;  %v1913_v3 = vpop.xlane.xlu1 %1912  ;;  %3770 = vmatmul.mubr.msk.f32.vlgmr.msra.gmra.mrb[6].mxu1 %vm1357_vm0, %v2175_v14  ;;  %v2145_v54 = vadd.f32 %v5236_v32, %v2106_v19  ;;  %v2069_v38 = vmul.f32 %v4212_v17, %v5043_v13 }
 0x412   : > { %v1916_v25 = vpop.xlane.xlu0 %1915  ;;  %4223 = vrsqrt.f32 %v2011_v5  ;;  %v1981_v24 = vmul.f32 0.03125, %v1913_v3  ;;  %3772 = vmatprep.mubr.msk.f32.mxu1 %vm1357_vm0, %v2176_v10  ;;  %3948 = vmatpush3.bf16.msra.mxu1 %v5176_v8  ;;  %v2070_v63 = vmul.f32 %v4214_v53, %v5046_v29  ;;  %v2146_v40 = vadd.f32 %v5236_v32, %v2107_v42 }
 0x413   : > { %v1982_v0 = vmul.f32 0.03125, %v1916_v25  ;;  %4225 = vrsqrt.f32 %v2012_v6  ;;  %v2177_v13 = vmax.f32 %v2145_v54, 0.0  ;;  %v2108_v30 = vmul.f32 %v5230_v36, %v2069_v38  ;;  %3950 = vmatprep.subr.bf16.mxu1 %v3949_v47  ;;  %v2215_v54 = vld [vmem:[%s5583_s24 + $0x48] sm:$0xff] }
 0x414   : > { %v4216_v2 = vpop.eup %4215  ;;  %v2013_v1 = vadd.f32 1e-05, %v1981_v24  ;;  %v2109_v29 = vmul.f32 %v5230_v36, %v2070_v63  ;;  %v2178_v17 = vmax.f32 %v2146_v40, 0.0  ;;  %v3957_v10 = vpack.c.bf16 %v2213_v44, %v2212_v21 }
 0x415   : > { %v2014_v8 = vadd.f32 1e-05, %v1982_v0  ;;  %v4218_v14 = vpop.eup %4217  ;;  %v1919_v19 = vpop.xlane.xlu1 %1918  ;;  %3773 = vmatmul.mubr.msk.f32.gmra.mrb[8].mxu1 %vm1357_vm0, %v2177_v13  ;;  %v2147_v5 = vadd.f32 %v5236_v32, %v2108_v30  ;;  %v2071_v6 = vmul.f32 %v4216_v2, %v5055_v39  ;;  %v2214_v0 = vld [vmem:[%s5583_s24 + $0x40] sm:$0xff] }
 0x416   : > { %v1922_v7 = vpop.xlane.xlu0 %1921  ;;  %4227 = vrsqrt.f32 %v2013_v1  ;;  %v1983_v53 = vmul.f32 0.03125, %v1919_v19  ;;  %v2148_v25 = vadd.f32 %v5236_v32, %v2109_v29  ;;  %3952 = vmatpush3.bf16.msra.mxu1 %v3949_v47  ;;  %3775 = vmatprep.mubr.msk.f32.mxu1 %vm1357_vm0, %v2178_v17  ;;  %v2072_v38 = vmul.f32 %v4218_v14, %v5058_v33  ;;  %v2216_v19 = vld [vmem:[%s5583_s24 + $0x50] sm:$0xff] }
 0x417   : > { %v1984_v3 = vmul.f32 0.03125, %v1922_v7  ;;  %4229 = vrsqrt.f32 %v2014_v8  ;;  %v2179_v42 = vmax.f32 %v2147_v5, 0.0  ;;  %v2110_v39 = vmul.f32 %v5230_v36, %v2071_v6  ;;  %3954 = vmatprep.subr.bf16.mxu1 %v3953_v4  ;;  %v2217_v7 = vld [vmem:[%s5583_s24 + $0x58] sm:$0xff] }
 0x418   : > { %v4220_v24 = vpop.eup %4219  ;;  %v2015_v63 = vadd.f32 1e-05, %v1983_v53  ;;  %v2180_v21 = vmax.f32 %v2148_v25, 0.0  ;;  %v2111_v2 = vmul.f32 %v5230_v36, %v2072_v38  ;;  %v3961_v8 = vpack.c.bf16 %v2215_v54, %v2214_v0 }
 0x419   : > { %v2016_v47 = vadd.f32 1e-05, %v1984_v3  ;;  %v4222_v44 = vpop.eup %4221  ;;  %v1925_v13 = vpop.xlane.xlu1 %1924  ;;  %3776 = vmatmul.mubr.msk.f32.gmra.mrb[10].mxu1 %vm1357_vm0, %v2179_v42  ;;  %v2149_v30 = vadd.f32 %v5236_v32, %v2110_v39  ;;  %v2073_v1 = vmul.f32 %v4220_v24, %v5067_v9  ;;  %v3965_v38 = vpack.c.bf16 %v2217_v7, %v2216_v19 }
 0x41a   : > { %v1928_v40 = vpop.xlane.xlu0 %1927  ;;  %4231 = vrsqrt.f32 %v2015_v63  ;;  %v1985_v29 = vmul.f32 0.03125, %v1925_v13  ;;  %3778 = vmatprep.mubr.msk.f32.mxu1 %vm1357_vm0, %v2180_v21  ;;  %v2074_v14 = vmul.f32 %v4222_v44, %v5070_v37  ;;  %3956 = vmatpush3.bf16.msra.mxu1 %v3953_v4  ;;  %v2150_v9 = vadd.f32 %v5236_v32, %v2111_v2  ;;  %v2218_v21 = vld [vmem:[%s5583_s24 + $0x60] sm:$0xff]  ;;  %v2219_v44 = vld [vmem:[%s5583_s24 + $0x68] sm:$0xff] }
 0x41b   : > { %v1986_v33 = vmul.f32 0.03125, %v1928_v40  ;;  %4233 = vrsqrt.f32 %v2016_v47  ;;  %v2181_v17 = vmax.f32 %v2149_v30, 0.0  ;;  %v2112_v5 = vmul.f32 %v5230_v36, %v2073_v1  ;;  %3958 = vmatprep.subr.bf16.mxu1 %v3957_v10 }
 0x41c   : > { %v4224_v6 = vpop.eup %4223  ;;  %v2017_v53 = vadd.f32 1e-05, %v1985_v29  ;;  %v2113_v37 = vmul.f32 %v5230_v36, %v2074_v14  ;;  %v2182_v54 = vmax.f32 %v2150_v9, 0.0  ;;  %v3969_v9 = vpack.c.bf16 %v2219_v44, %v2218_v21 }
 0x41d   : > { %v2018_v3 = vadd.f32 1e-05, %v1986_v33  ;;  %v4226_v4 = vpop.eup %4225  ;;  %v1931_v25 = vpop.xlane.xlu1 %1930  ;;  %3779 = vmatmul.mubr.msk.f32.gmra.mrb[12].mxu1 %vm1357_vm0, %v2181_v17  ;;  %v2151_v42 = vadd.f32 %v5236_v32, %v2112_v5  ;;  %v2075_v39 = vmul.f32 %v4224_v6, %v5079_v11 }
 0x41e   : > { %v1934_v0 = vpop.xlane.xlu0 %1933  ;;  %4235 = vrsqrt.f32 %v2017_v53  ;;  %v1987_v24 = vmul.f32 0.03125, %v1931_v25  ;;  %v2152_v47 = vadd.f32 %v5236_v32, %v2113_v37  ;;  %3960 = vmatpush3.bf16.msra.mxu1 %v3957_v10  ;;  %3781 = vmatprep.mubr.msk.f32.mxu1 %vm1357_vm0, %v2182_v54  ;;  %v2076_v40 = vmul.f32 %v4226_v4, %v5082_v41  ;;  %v2220_v53 = vld [vmem:[%s5583_s24 + $0x70] sm:$0xff] }
 0x41f   : > { %v1988_v63 = vmul.f32 0.03125, %v1934_v0  ;;  %4237 = vrsqrt.f32 %v2018_v3  ;;  %v2183_v13 = vmax.f32 %v2151_v42, 0.0  ;;  %v2114_v11 = vmul.f32 %v5230_v36, %v2075_v39  ;;  %3962 = vmatprep.subr.bf16.mxu1 %v3961_v8  ;;  %v2221_v3 = vld [vmem:[%s5583_s24 + $0x78] sm:$0xff] }
 0x420   : > { %v4228_v30 = vpop.eup %4227  ;;  %v2019_v2 = vadd.f32 1e-05, %v1987_v24  ;;  %v2184_v1 = vmax.f32 %v2152_v47, 0.0  ;;  %v2115_v7 = vmul.f32 %v5230_v36, %v2076_v40  ;;  %v3973_v21 = vpack.c.bf16 %v2221_v3, %v2220_v53 }
 0x421   : > { %v2020_v10 = vadd.f32 1e-05, %v1988_v63  ;;  %v4230_v29 = vpop.eup %4229  ;;  %v1937_v33 = vpop.xlane.xlu1 %1936  ;;  %3782 = vmatmul.mubr.msk.f32.gmra.mrb[14].mxu1 %vm1357_vm0, %v2183_v13  ;;  %v2153_v19 = vadd.f32 %v5236_v32, %v2114_v11  ;;  %v2077_v17 = vmul.f32 %v4228_v30, %v5091_v15 }
 0x422   : > { %v1940_v14 = vpop.xlane.xlu0 %1939  ;;  %4239 = vrsqrt.f32 %v2019_v2  ;;  %v1989_v5 = vmul.f32 0.03125, %v1937_v33  ;;  %3784 = vmatprep.mubr.msk.f32.mxu1 %vm1357_vm0, %v2184_v1  ;;  %v2078_v6 = vmul.f32 %v4230_v29, %v5094_v45  ;;  %3964 = vmatpush3.bf16.msra.mxu1 %v3961_v8  ;;  %v2154_v15 = vadd.f32 %v5236_v32, %v2115_v7 }
 0x423   : > { %v1990_v41 = vmul.f32 0.03125, %v1940_v14  ;;  %4241 = vrsqrt.f32 %v2020_v10  ;;  %v2185_v37 = vmax.f32 %v2153_v19, 0.0  ;;  %v2116_v4 = vmul.f32 %v5230_v36, %v2077_v17  ;;  %3966 = vmatprep.subr.bf16.mxu1 %v3965_v38 }
 0x424   : > { %v4232_v25 = vpop.eup %4231  ;;  %v2021_v0 = vadd.f32 1e-05, %v1989_v5  ;;  %v2117_v45 = vmul.f32 %v5230_v36, %v2078_v6  ;;  %v2186_v24 = vmax.f32 %v2154_v15, 0.0 }
 0x425   : > { %v2022_v54 = vadd.f32 1e-05, %v1990_v41  ;;  %v4234_v8 = vpop.eup %4233  ;;  %v1943_v42 = vpop.xlane.xlu1 %1942  ;;  %3785 = vmatmul.mubr.msk.f32.gmra.mrb[16].mxu1 %vm1357_vm0, %v2185_v37  ;;  %v2155_v63 = vadd.f32 %v5236_v32, %v2116_v4  ;;  %v2079_v47 = vmul.f32 %v4232_v25, %v5103_v46 }
 0x426   : > { %v1946_v39 = vpop.xlane.xlu0 %1945  ;;  %4243 = vrsqrt.f32 %v2021_v0  ;;  %v1991_v44 = vmul.f32 0.03125, %v1943_v42  ;;  %v2156_v11 = vadd.f32 %v5236_v32, %v2117_v45  ;;  %3968 = vmatpush3.bf16.msra.mxu1 %v3965_v38  ;;  %3787 = vmatprep.mubr.msk.f32.mxu1 %vm1357_vm0, %v2186_v24  ;;  %v2080_v2 = vmul.f32 %v4234_v8, %v5106_v27 }
 0x427   : > { %v1992_v13 = vmul.f32 0.03125, %v1946_v39  ;;  %4245 = vrsqrt.f32 %v2022_v54  ;;  %v2187_v40 = vmax.f32 %v2155_v63, 0.0  ;;  %v2118_v30 = vmul.f32 %v5230_v36, %v2079_v47  ;;  %3970 = vmatprep.subr.bf16.mxu1 %v3969_v9 }
 0x428   : > { %v4236_v10 = vpop.eup %4235  ;;  %v2023_v1 = vadd.f32 1e-05, %v1991_v44  ;;  %v2188_v46 = vmax.f32 %v2156_v11, 0.0  ;;  %v2119_v7 = vmul.f32 %v5230_v36, %v2080_v2 }
 0x429   : > { %v2024_v29 = vadd.f32 1e-05, %v1992_v13  ;;  %v4238_v33 = vpop.eup %4237  ;;  %v1949_v14 = vpop.xlane.xlu1 %1948  ;;  %3788 = vmatmul.mubr.msk.f32.gmra.mrb[18].mxu1 %vm1357_vm0, %v2187_v40  ;;  %v2157_v38 = vadd.f32 %v5236_v32, %v2118_v30  ;;  %v2081_v17 = vmul.f32 %v4236_v10, %v5115_v12 }
 0x42a   : > { %v1952_v19 = vpop.xlane.xlu0 %1951  ;;  %4247 = vrsqrt.f32 %v2023_v1  ;;  %v1993_v5 = vmul.f32 0.03125, %v1949_v14  ;;  %3790 = vmatprep.mubr.msk.f32.mxu1 %vm1357_vm0, %v2188_v46  ;;  %v2082_v27 = vmul.f32 %v4238_v33, %v5118_v35  ;;  %3972 = vmatpush3.bf16.msra.mxu1 %v3969_v9  ;;  %v2158_v53 = vadd.f32 %v5236_v32, %v2119_v7 }
 0x42b   : > { %v1994_v41 = vmul.f32 0.03125, %v1952_v19  ;;  %4249 = vrsqrt.f32 %v2024_v29  ;;  %v2189_v6 = vmax.f32 %v2157_v38, 0.0  ;;  %v2120_v3 = vmul.f32 %v5230_v36, %v2081_v17  ;;  %3974 = vmatprep.subr.bf16.mxu1 %v3973_v21 }
 0x42c   : > { %v4240_v37 = vpop.eup %4239  ;;  %v2025_v15 = vadd.f32 1e-05, %v1993_v5  ;;  %v2121_v12 = vmul.f32 %v5230_v36, %v2082_v27  ;;  %v2190_v45 = vmax.f32 %v2158_v53, 0.0 }
 0x42d   : > { %v2026_v4 = vadd.f32 1e-05, %v1994_v41  ;;  %v4242_v25 = vpop.eup %4241  ;;  %v1955_v0 = vpop.xlane.xlu1 %1954  ;;  %3791 = vmatmul.mubr.msk.f32.gmra.mrb[20].mxu1 %vm1357_vm0, %v2189_v6  ;;  %v2159_v35 = vadd.f32 %v5236_v32, %v2120_v3  ;;  %v2083_v9 = vmul.f32 %v4240_v37, %v5133_v23 }
 0x42e   : > { %v1958_v54 = vpop.xlane.xlu0 %1957  ;;  %4251 = vrsqrt.f32 %v2025_v15  ;;  %v1995_v8 = vmul.f32 0.03125, %v1955_v0  ;;  %v2160_v39 = vadd.f32 %v5236_v32, %v2121_v12  ;;  %3976 = vmatpush3.bf16.msra.mxu1 %v3973_v21  ;;  %3793 = vmatprep.mubr.msk.f32.mxu1 %vm1357_vm0, %v2190_v45  ;;  %v2084_v47 = vmul.f32 %v4242_v25, %v5136_v26 }
 0x42f   : > { %v1996_v42 = vmul.f32 0.03125, %v1958_v54  ;;  %4253 = vrsqrt.f32 %v2026_v4  ;;  %v2191_v24 = vmax.f32 %v2159_v35, 0.0  ;;  %v2122_v63 = vmul.f32 %v5230_v36, %v2083_v9 }
 0x430   : > { %v4244_v44 = vpop.eup %4243  ;;  %v2027_v13 = vadd.f32 1e-05, %v1995_v8  ;;  %v2192_v40 = vmax.f32 %v2160_v39, 0.0  ;;  %v2123_v21 = vmul.f32 %v5230_v36, %v2084_v47 }
 0x431   : > { %v2028_v11 = vadd.f32 1e-05, %v1996_v42  ;;  %v4246_v30 = vpop.eup %4245  ;;  %v1961_v23 = vpop.xlane.xlu1 %1960  ;;  %3794 = vmatmul.mubr.msk.f32.gmra.mrb[22].mxu1 %vm1357_vm0, %v2191_v24  ;;  %v2161_v10 = vadd.f32 %v5236_v32, %v2122_v63  ;;  %v2085_v1 = vmul.f32 %v4244_v44, %v5151_v43 }
 0x432   : > { %v1964_v2 = vpop.xlane.xlu0 %1963  ;;  %4255 = vrsqrt.f32 %v2027_v13  ;;  %v1997_v29 = vmul.f32 0.03125, %v1961_v23  ;;  %3796 = vmatprep.mubr.msk.f32.mxu1 %vm1357_vm0, %v2192_v40  ;;  %v2086_v26 = vmul.f32 %v4246_v30, %v5154_v22  ;;  %v2162_v14 = vadd.f32 %v5236_v32, %v2123_v21 }
 0x433   : > { %v1998_v46 = vmul.f32 0.03125, %v1964_v2  ;;  %4257 = vrsqrt.f32 %v2028_v11  ;;  %v2193_v33 = vmax.f32 %v2161_v10, 0.0  ;;  %v2124_v19 = vmul.f32 %v5230_v36, %v2085_v1 }
 0x434   : > { %v4248_v38 = vpop.eup %4247  ;;  %v2029_v7 = vadd.f32 1e-05, %v1997_v29  ;;  %v2125_v5 = vmul.f32 %v5230_v36, %v2086_v26  ;;  %v2194_v27 = vmax.f32 %v2162_v14, 0.0 }
 0x435   : > { %v2030_v17 = vadd.f32 1e-05, %v1998_v46  ;;  %v4250_v41 = vpop.eup %4249  ;;  %v1967_v43 = vpop.xlane.xlu1 %1966  ;;  %3797 = vmatmul.mubr.msk.f32.gmra.mrb[24].mxu1 %vm1357_vm0, %v2193_v33  ;;  %v2163_v6 = vadd.f32 %v5236_v32, %v2124_v19  ;;  %v2087_v22 = vmul.f32 %v4248_v38, %v5163_v20 }
 0x436   : > { %4259 = vrsqrt.f32 %v2029_v7  ;;  %v1999_v53 = vmul.f32 0.03125, %v1967_v43  ;;  %v2164_v3 = vadd.f32 %v5236_v32, %v2125_v5  ;;  %v2088_v37 = vmul.f32 %v4250_v41, %v5166_v31  ;;  %3799 = vmatprep.mubr.msk.f32.mxu1 %vm1357_vm0, %v2194_v27 }
 0x437   : > { %4261 = vrsqrt.f32 %v2030_v17  ;;  %v2195_v15 = vmax.f32 %v2163_v6, 0.0  ;;  %v2126_v4 = vmul.f32 %v5230_v36, %v2087_v22  ;;  %v1290_v43 = vmax.f32 %v4830_v51, 0.0 }
 0x438   : > { %v4252_v12 = vpop.eup %4251  ;;  %v2031_v25 = vadd.f32 1e-05, %v1999_v53  ;;  %v2196_v0 = vmax.f32 %v2164_v3, 0.0  ;;  %v2127_v54 = vmul.f32 %v5230_v36, %v2088_v37  ;;  %v1291_v27 = vmax.f32 %v4840_v56, 0.0  ;;  %v5586_v53 = vld [vmem:[#allocation15_spill] sm:$0xff]  ;;  %v5588_v37 = vld [vmem:[#allocation17_spill] sm:$0xff] }
 0x439   : > { %v4254_v45 = vpop.eup %4253  ;;  %3800 = vmatmul.mubr.msk.f32.gmra.mrb[26].mxu1 %vm1357_vm0, %v2195_v15  ;;  %v2165_v20 = vadd.f32 %v5236_v32, %v2126_v4  ;;  %v2089_v35 = vmul.f32 %v4252_v12, %v5184_v28  ;;  %v1293_v6 = vmax.f32 %v4844_v58, 0.0  ;;  %v1295_v22 = vmax.f32 %v4848_v60, 0.0  ;;  %v5587_v58 = vld [vmem:[#allocation14_spill] sm:$0xff]  ;;  %v5589_v60 = vld [vmem:[#allocation16_spill] sm:$0xff]  ;;  %v5590_v4 = vld [vmem:[#allocation19_spill] sm:$0xff] }
 0x43a   : > { %4263 = vrsqrt.f32 %v2031_v25  ;;  %3802 = vmatprep.mubr.msk.f32.mxu1 %vm1357_vm0, %v2196_v0  ;;  %v2166_v31 = vadd.f32 %v5236_v32, %v2127_v54  ;;  %v2090_v9 = vmul.f32 %v4254_v45, %v5187_v16  ;;  %v1297_v51 = vmax.f32 %v4852_v62, 0.0  ;;  %v5591_v62 = vld [vmem:[#allocation18_spill] sm:$0xff]  ;;  %v5592_v25 = vld [vmem:[#allocation21_spill] sm:$0xff]  ;;  %v5593_v0 = vld [vmem:[#allocation20_spill] sm:$0xff] }
 0x43b   : > { %v2197_v8 = vmax.f32 %v2165_v20, 0.0  ;;  %v2128_v42 = vmul.f32 %v5230_v36, %v2089_v35  ;;  %v1298_v56 = vmax.f32 %v4850_v61, 0.0  ;;  %v1300_v3 = vmax.f32 %v5587_v58, 0.0  ;;  %v5594_v45 = vld [vmem:[#allocation23_spill] sm:$0xff]  ;;  %v5595_v35 = vld [vmem:[#allocation22_spill] sm:$0xff] }
 0x43c   : > { %v4256_v39 = vpop.eup %4255  ;;  %v2198_v24 = vmax.f32 %v2166_v31, 0.0  ;;  %v2129_v63 = vmul.f32 %v5230_v36, %v2090_v9  ;;  %v1302_v15 = vmax.f32 %v5589_v60, 0.0  ;;  %v1304_v12 = vmax.f32 %v5591_v62, 0.0  ;;  %v5596_v9 = vld [vmem:[#allocation25_spill] sm:$0xff] }
 0x43d   : > { %v4258_v47 = vpop.eup %4257  ;;  %3803 = vmatmul.mubr.msk.f32.gmra.mrb[28].mxu1 %vm1357_vm0, %v2197_v8  ;;  %v2167_v44 = vadd.f32 %v5236_v32, %v2128_v42  ;;  %v2091_v28 = vmul.f32 %v4256_v39, %v5196_v18  ;;  %v1305_v61 = vmax.f32 %v5592_v25, 0.0  ;;  %v1306_v54 = vmax.f32 %v5593_v0, 0.0  ;;  %v5597_v42 = vld [vmem:[#allocation24_spill] sm:$0xff] }
 0x43e   : > { %3805 = vmatprep.mubr.msk.f32.mxu1 %vm1357_vm0, %v2198_v24  ;;  %v2168_v13 = vadd.f32 %v5236_v32, %v2129_v63  ;;  %v2092_v16 = vmul.f32 %v4258_v47, %v5199_v48  ;;  %v1307_v20 = vmax.f32 %v5594_v45, 0.0  ;;  %v1308_v31 = vmax.f32 %v5595_v35, 0.0  ;;  %v5598_v24 = vld [vmem:[#allocation27_spill] sm:$0xff]  ;;  %v5599_v47 = vld [vmem:[#allocation26_spill] sm:$0xff] }
 0x43f   : > { %v2199_v11 = vmax.f32 %v2167_v44, 0.0  ;;  %v2130_v40 = vmul.f32 %v5230_v36, %v2091_v28  ;;  %v1309_v8 = vmax.f32 %v5596_v9, 0.0  ;;  %v1310_v39 = vmax.f32 %v5597_v42, 0.0  ;;  %v5600_v28 = vld [vmem:[#allocation29_spill] sm:$0xff] }
 0x440   : > { %v4260_v30 = vpop.eup %4259  ;;  %v2200_v23 = vmax.f32 %v2168_v13, 0.0  ;;  %v2131_v2 = vmul.f32 %v5230_v36, %v2092_v16  ;;  %v1311_v63 = vmax.f32 %v5598_v24, 0.0  ;;  %v1312_v44 = vmax.f32 %v5599_v47, 0.0  ;;  %v5601_v16 = vld [vmem:[#allocation28_spill] sm:$0xff] }
 0x441   : > { %v4262_v10 = vpop.eup %4261  ;;  %3806 = vmatmul.mubr.msk.f32.gmra.mrb[30].mxu1 %vm1357_vm0, %v2199_v11  ;;  %v2169_v21 = vadd.f32 %v5236_v32, %v2130_v40  ;;  %v2093_v18 = vmul.f32 %v4260_v30, %v5208_v34  ;;  %v1313_v13 = vmax.f32 %v5600_v28, 0.0  ;;  %v1314_v11 = vmax.f32 %v5601_v16, 0.0  ;;  %v5602_v40 = vld [vmem:[#allocation31_spill] sm:$0xff] }
 0x442   : > { %v2094_v1 = vmul.f32 %v4262_v10, %v5211_v50  ;;  %3808 = vmatprep.mubr.msk.f32.mxu1 %vm1357_vm0, %v2200_v23  ;;  %v2170_v48 = vadd.f32 %v5236_v32, %v2131_v2  ;;  %v1315_v30 = vmax.f32 %v5602_v40, 0.0  ;;  %v5603_v23 = vld [vmem:[#allocation30_spill] sm:$0xff]  ;;  %v5604_v10 = vld [vmem:[#allocation33_spill] sm:$0xff] }
 0x443   : > { %v2201_v29 = vmax.f32 %v2169_v21, 0.0  ;;  %v2132_v46 = vmul.f32 %v5230_v36, %v2093_v18  ;;  %v1316_v2 = vmax.f32 %v5603_v23, 0.0  ;;  %v1317_v21 = vmax.f32 %v5604_v10, 0.0  ;;  %v5605_v18 = vld [vmem:[#allocation32_spill] sm:$0xff] }
 0x444   : > { %v4264_v26 = vpop.eup %4263  ;;  %v2202_v33 = vmax.f32 %v2170_v48, 0.0  ;;  %v2133_v14 = vmul.f32 %v5230_v36, %v2094_v1  ;;  %v1318_v1 = vmax.f32 %v5605_v18, 0.0  ;;  %v5606_v48 = vld [vmem:[#allocation35_spill] sm:$0xff] }
 0x445   : > { %v2095_v19 = vmul.f32 %v4264_v26, %v5220_v49  ;;  %3809 = vmatmul.mubr.msk.f32.gmra.mrb[32].mxu1 %vm1357_vm0, %v2201_v29  ;;  %v2171_v38 = vadd.f32 %v5236_v32, %v2132_v46  ;;  %v1289_v49 = vmax.f32 %v4832_v52, 0.0  ;;  %v1296_v52 = vmax.f32 %v4846_v59, 0.0  ;;  %v5607_v46 = vld [vmem:[#allocation34_spill] sm:$0xff] }
 0x446   : > { %3811 = vmatprep.mubr.msk.f32.mxu1 %vm1357_vm0, %v2202_v33  ;;  %v2172_v34 = vadd.f32 %v5236_v32, %v2133_v14  ;;  %v1303_v59 = vmax.f32 %v5590_v4, 0.0  ;;  %v1319_v29 = vmax.f32 %v5606_v48, 0.0  ;;  %v1320_v26 = vmax.f32 %v5607_v46, 0.0 }
 0x447   : > { %v2203_v50 = vmax.f32 %v2171_v38, 0.0  ;;  %v2134_v7 = vmul.f32 %v5230_v36, %v2095_v19  ;;  %v1292_v36 = vmax.f32 %v4838_v55, 0.0  ;;  %v1299_v55 = vmax.f32 %v5586_v53, 0.0 }
 0x448   : > { %v2204_v17 = vmax.f32 %v2172_v34, 0.0 }
 0x449   : > { %3812 = vmatmul.mubr.msk.f32.gmra.mrb[34].mxu1 %vm1357_vm0, %v2203_v50  ;;  %v2173_v5 = vadd.f32 %v5236_v32, %v2134_v7  ;;  %v1294_v32 = vmax.f32 %v4842_v57, 0.0  ;;  %v1301_v57 = vmax.f32 %v5588_v37, 0.0 }
 0x44a   : > { %3814 = vmatprep.mubr.msk.f32.mxu1 %vm1357_vm0, %v2204_v17 }
 0x44b   : > { %v2205_v41 = vmax.f32 %v2173_v5, 0.0 }
 0x44d   : > { %3815 = vmatmul.mubr.msk.f32.gmra.mrb[36].mxu1 %vm1357_vm0, %v2205_v41 }
 0x44e   : > { %3849 = vmatprep.mubr.f32.mxu1 %v1289_v49 }
 0x451   : > { %3850 = vmatmul.mubr.f32.vlgmr.msra.gmra.mrb[6].mxu1 %v1290_v43 }
 0x452   : > { %3852 = vmatprep.mubr.f32.mxu1 %v1291_v27 }
 0x455   : > { %3853 = vmatmul.mubr.f32.gmra.mrb[8].mxu1 %v1292_v36 }
 0x456   : > { %3855 = vmatprep.mubr.f32.mxu1 %v1293_v6 }
 0x459   : > { %3856 = vmatmul.mubr.f32.gmra.mrb[10].mxu1 %v1294_v32 }
 0x45a   : > { %3858 = vmatprep.mubr.f32.mxu1 %v1295_v22 }
 0x45d   : > { %3859 = vmatmul.mubr.f32.gmra.mrb[12].mxu1 %v1296_v52 }
 0x45e   : > { %3861 = vmatprep.mubr.f32.mxu1 %v1297_v51 }
 0x461   : > { %3862 = vmatmul.mubr.f32.gmra.mrb[14].mxu1 %v1298_v56 }
 0x462   : > { %3864 = vmatprep.mubr.f32.mxu1 %v1299_v55 }
 0x465   : > { %3865 = vmatmul.mubr.f32.gmra.mrb[16].mxu1 %v1300_v3 }
 0x466   : > { %3867 = vmatprep.mubr.f32.mxu1 %v1301_v57 }
 0x469   : > { %3868 = vmatmul.mubr.f32.gmra.mrb[18].mxu1 %v1302_v15 }
 0x46a   : > { %3870 = vmatprep.mubr.f32.mxu1 %v1303_v59 }
 0x46d   : > { %3871 = vmatmul.mubr.f32.gmra.mrb[20].mxu1 %v1304_v12 }
 0x46e   : > { %3873 = vmatprep.mubr.f32.mxu1 %v1305_v61 }
 0x471   : > { %3874 = vmatmul.mubr.f32.gmra.mrb[22].mxu1 %v1306_v54 }
 0x472   : > { %3876 = vmatprep.mubr.f32.mxu1 %v1307_v20 }
 0x475   : > { %3877 = vmatmul.mubr.f32.gmra.mrb[24].mxu1 %v1308_v31 }
 0x476   : > { %3879 = vmatprep.mubr.f32.mxu1 %v1309_v8 }
 0x479   : > { %3880 = vmatmul.mubr.f32.gmra.mrb[26].mxu1 %v1310_v39 }
 0x47a   : > { %3882 = vmatprep.mubr.f32.mxu1 %v1311_v63 }
 0x47d   : > { %3883 = vmatmul.mubr.f32.gmra.mrb[28].mxu1 %v1312_v44 }
 0x47e   : > { %3885 = vmatprep.mubr.f32.mxu1 %v1313_v13 }
 0x481   : > { %3886 = vmatmul.mubr.f32.gmra.mrb[30].mxu1 %v1314_v11 }
 0x482   : > { %3888 = vmatprep.mubr.f32.mxu1 %v1315_v30 }
 0x485   : > { %3889 = vmatmul.mubr.f32.gmra.mrb[32].mxu1 %v1316_v2 }
 0x486   : > { %3891 = vmatprep.mubr.f32.mxu1 %v1317_v21 }
 0x489   : > { %3892 = vmatmul.mubr.f32.gmra.mrb[34].mxu1 %v1318_v1 }
 0x48a   : > { %3894 = vmatprep.mubr.f32.mxu1 %v1319_v29 }
 0x48d   : > { %3895 = vmatmul.mubr.f32.gmra.mrb[36].mxu1 %v1320_v26 }
 0x524   : > { %v3851_v33 = vpop.f32.mrb[6].mxu1 }
 0x525   : > { %v2613_v14 = vpop.f32.mrb[7].mxu1 }
 0x526   : > { %v3253_v19 = vpack.c.bf16 %v3851_v33, %v2613_v14 }
 0x528   : > { %3254 = vst [vmem:[%s4640_s26] sm:$0xff] %v3253_v19   ;;  %v3854_v38 = vpop.f32.mrb[8].mxu1 }
 0x529   : > { %v2623_v34 = vpop.f32.mrb[9].mxu1 }
 0x52a   : > { %v3258_v50 = vpack.c.bf16 %v3854_v38, %v2623_v34 }
 0x52c   : > { %3330 = vst [vmem:[%s4640_s26 + $0x8] sm:$0xff] %v3258_v50   ;;  %v3857_v7 = vpop.f32.mrb[10].mxu1 }
 0x52d   : > { %v2633_v17 = vpop.f32.mrb[11].mxu1 }
 0x52e   : > { %v3263_v5 = vpack.c.bf16 %v3857_v7, %v2633_v17 }
 0x530   : > { %3331 = vst [vmem:[%s4640_s26 + $0x10] sm:$0xff] %v3263_v5   ;;  %v3860_v41 = vpop.f32.mrb[12].mxu1 }
 0x531   : > { %v2643_v49 = vpop.f32.mrb[13].mxu1 }
 0x532   : > { %v3268_v43 = vpack.c.bf16 %v3860_v41, %v2643_v49 }
 0x534   : > { %3332 = vst [vmem:[%s4640_s26 + $0x18] sm:$0xff] %v3268_v43   ;;  %v3863_v27 = vpop.f32.mrb[14].mxu1 }
 0x535   : > { %v2653_v36 = vpop.f32.mrb[15].mxu1 }
 0x536   : > { %v3273_v6 = vpack.c.bf16 %v3863_v27, %v2653_v36 }
 0x538   : > { %3333 = vst [vmem:[%s4640_s26 + $0x20] sm:$0xff] %v3273_v6   ;;  %v3866_v32 = vpop.f32.mrb[16].mxu1 }
 0x539   : > { %v2663_v22 = vpop.f32.mrb[17].mxu1 }
 0x53a   : > { %v3278_v52 = vpack.c.bf16 %v3866_v32, %v2663_v22 }
 0x53c   : > { %3334 = vst [vmem:[%s4640_s26 + $0x28] sm:$0xff] %v3278_v52   ;;  %v3869_v51 = vpop.f32.mrb[18].mxu1 }
 0x53d   : > { %v2673_v56 = vpop.f32.mrb[19].mxu1 }
 0x53e   : > { %v3283_v53 = vpack.c.bf16 %v3869_v51, %v2673_v56 }
 0x540   : > { %3335 = vst [vmem:[%s4640_s26 + $0x30] sm:$0xff] %v3283_v53   ;;  %v3872_v55 = vpop.f32.mrb[20].mxu1 }
 0x541   : > { %v2683_v58 = vpop.f32.mrb[21].mxu1 }
 0x542   : > { %v3288_v3 = vpack.c.bf16 %v3872_v55, %v2683_v58 }
 0x544   : > { %3336 = vst [vmem:[%s4640_s26 + $0x38] sm:$0xff] %v3288_v3   ;;  %v3875_v37 = vpop.f32.mrb[22].mxu1 }
 0x545   : > { %v2693_v57 = vpop.f32.mrb[23].mxu1 }
 0x546   : > { %v3293_v60 = vpack.c.bf16 %v3875_v37, %v2693_v57 }
 0x548   : > { %3337 = vst [vmem:[%s4640_s26 + $0x40] sm:$0xff] %v3293_v60   ;;  %v3878_v15 = vpop.f32.mrb[24].mxu1 }
 0x549   : > { %v2703_v4 = vpop.f32.mrb[25].mxu1 }
 0x54a   : > { %v3298_v59 = vpack.c.bf16 %v3878_v15, %v2703_v4 }
 0x54c   : > { %3338 = vst [vmem:[%s4640_s26 + $0x48] sm:$0xff] %v3298_v59   ;;  %v3881_v62 = vpop.f32.mrb[26].mxu1 }
 0x54d   : > { %v2713_v12 = vpop.f32.mrb[27].mxu1 }
 0x54e   : > { %v3303_v25 = vpack.c.bf16 %v3881_v62, %v2713_v12 }
 0x550   : > { %3339 = vst [vmem:[%s4640_s26 + $0x50] sm:$0xff] %v3303_v25   ;;  %v3884_v61 = vpop.f32.mrb[28].mxu1 }
 0x551   : > { %v2723_v0 = vpop.f32.mrb[29].mxu1 }
 0x552   : > { %v3308_v54 = vpack.c.bf16 %v3884_v61, %v2723_v0 }
 0x554   : > { %3340 = vst [vmem:[%s4640_s26 + $0x58] sm:$0xff] %v3308_v54   ;;  %v3887_v45 = vpop.f32.mrb[30].mxu1 }
 0x555   : > { %v2733_v20 = vpop.f32.mrb[31].mxu1 }
 0x556   : > { %v3313_v35 = vpack.c.bf16 %v3887_v45, %v2733_v20 }
 0x558   : > { %3341 = vst [vmem:[%s4640_s26 + $0x60] sm:$0xff] %v3313_v35   ;;  %v3890_v31 = vpop.f32.mrb[32].mxu1 }
 0x559   : > { %v2743_v9 = vpop.f32.mrb[33].mxu1 }
 0x55a   : > { %v3318_v8 = vpack.c.bf16 %v3890_v31, %v2743_v9 }
 0x55c   : > { %3342 = vst [vmem:[%s4640_s26 + $0x68] sm:$0xff] %v3318_v8   ;;  %v3893_v42 = vpop.f32.mrb[34].mxu1 }
 0x55d   : > { %v2753_v39 = vpop.f32.mrb[35].mxu1 }
 0x55e   : > { %v3323_v24 = vpack.c.bf16 %v3893_v42, %v2753_v39 }
 0x560   : > { %3343 = vst [vmem:[%s4640_s26 + $0x70] sm:$0xff] %v3323_v24   ;;  %v3896_v63 = vpop.f32.mrb[36].mxu1 }
 0x561   : > { %v2763_v47 = vpop.f32.mrb[37].mxu1 }
 0x562   : > { %v3328_v44 = vpack.c.bf16 %v3896_v63, %v2763_v47 }
 0x564   : > { %3344 = vst [vmem:[%s4640_s26 + $0x78] sm:$0xff] %v3328_v44  }
 0x565 PF: > { %s5608_s23 = sld [smem:[#allocation12_spill]]  ;;  %s3249_s21 = sshll.u32 %s4405_s16, 11 }
 0x566   : > { %s5609_s28 = sld [smem:[#allocation39_spill]]  ;;  %s2946_s22 = sshll.u32 %s4640_s26, 4  ;;  %s5463_s22 = int_to_ptr.vmem [resolvable:$true] %s2946_s22 }
 0x567   : > { %s5467_s15 = scalar_lea.sflag [#allocation5], %s381_s7  ;;  %s4295_s29 = scalar_lea.vmem %s5463_s22, 2048 }
 0x568   : > { %p4296_p4 = scmp.ne.s32.totalorder %s5463_s22, %s4295_s29  ;;  %s4424_s16 = smov [#allocation6]  }
 0x569   : > { %s4299_s20 = sshll.u32 %s4424_s16, 4  ;;  %s4300_s20 = int_to_ptr.vmem [resolvable:$false] %s4299_s20 }
 0x56a   : > { %s4301_s14 = scalar_lea.vmem %s4300_s20, 4096  ;;  %p4302_p8 = scmp.lt.s32.totalorder %s5463_s22, %s4300_s20 }
 0x56b   : > { %p5610_p0 = scmp.ne.s32.totalorder %s5608_s23, 0  ;;  %p4303_p10 = scmp.lt.s32.totalorder %s4301_s14, %s4295_s29 }
 0x56c   : > { %s5460_s25 = scalar_lea.hbm %s5609_s28, %s3249_s21 }
 0x56d   : > { %p4297_p1 = pnand %p4296_p4, %p5610_p0  ;;  %p4304_p11 = por %p4303_p10, %p4302_p8 }
 0x56f   : > { %p4298_p6 = pneg %p4297_p1 }
 0x571   : > { %p4305_p13 = pnand %p4304_p11, %p4298_p6 }
 0x573   : > { %4308 = shalt.err (!%p4305_p13)
}
 0x574   : > { %s4309_s7 = scalar_lea.hbm %s5460_s25, 2048  ;;  %s4313_s21 = scalar_lea.hbm %s5609_s28, 4096 }
 0x575   : > { %p4310_p5 = scmp.ne.s32.totalorder %s5460_s25, %s4309_s7  ;;  %p4314_p12 = scmp.lt.u32.totalorder %s5460_s25, %s5609_s28 }
 0x576   : > { %p4315_p2 = scmp.lt.u32.totalorder %s4313_s21, %s4309_s7  ;;  %p4317_p4 = scmp.lt.u32.totalorder %s4309_s7, %s5460_s25 }
 0x577   : > { %p4311_p3 = pnand %p4310_p5, %p5610_p0 }
 0x578   : > { %p4316_p7 = por %p4315_p2, %p4314_p12 }
 0x579   : > { %p4312_p9 = pneg %p4311_p3 }
 0x57a   : > { %p4318_p1 = por %p4317_p4, %p4316_p7 }
 0x57c   : > { %p4319_p6 = pnand %p4318_p1, %p4312_p9 }
 0x57e   : > { %4322 = shalt.err (!%p4319_p6)
}
 0x57f   : > { %s4425_s29 = smov 64   ;;  %s4426_s16 = smov 4  }
 0x580   : > { %4031 = dma.vmem_to_hbm [thread:$0]  (%p5610_p0), %s5463_s22, 2048, %s5460_s25, %s5467_s15, %s4425_s29, %s4425_s29, %s4426_s16  }
 0x581 PF: > { %p4042_p8 = scmp.ge.s32.totalorder %s4417_s19, 2  ;;  %s2961_s20 = sand.u32 1, %s4377_s30  }
 0x582   : > { %p5611_p10 = scmp.ne.s32.totalorder %s5558_s5, 0  ;;  %s2962_s14 = scalar_lea.sflag [#allocation5], %s2961_s20 }
 0x584   : > { %p4038_p11 = pnand %p4042_p8, %p5611_p10 }
 0x586   : > { %4372 = dma.done.wait (!%p4038_p11), %s2962_s14, 2048  }
 0x587   : > { %4374 = vsyncadd (!%p4038_p11), %s2962_s14, 4294965248  ;;  %s25_s19 = sadd.s32 1, %s4417_s19   ;;  %s5612_s23 = sld [smem:[#allocation9_spill]] }
 0x588   : > { %p22_p13 = scmp.ge.s32.totalorder %s25_s19, 6   ;;  %s5613_s14 = sld [smem:[#allocation13_spill]] }
 0x589   : > { %s5614_s25 = sld [smem:[#allocation10_spill]]  ;;  %s5615_s22 = sld [smem:[#allocation11_spill]] }
 0x58a   : > { %s5616_s30 = smov %s4381_s10  ;;  %s5617_s10 = smov %s4385_s11 }
 0x58b   : > { %s5618_s11 = smov %s4564_s9  ;;  %s5619_s12 = smov %s4393_s13 }
 0x58c   : > { %s5621_s15 = smov %s4409_s17  ;;  %s5622_s16 = smov %s4413_s18 }
 0x58d   : > { %s5620_s13 = smov %s5612_s23  ;;  %24 = sbr.rel (!%p22_p13) target bundleno = 14 (0xe), region = 113 }
 0x58f   : > { %s5623_s17 = smov %s5614_s25  ;;  %s5624_s18 = smov %s5615_s22 }
 0x594   :  { %2967 = vsyncpa [#allocation4], 1 }
 0x595   :  { %2969 = vsyncpa [#allocation4 + $0x1], 1 }
 0x596   :  { %2970 = vsyncpa [#allocation5], 1 }
 0x597   :  { %2972 = vsyncpa [#allocation5 + $0x1], 1 }

</bundles_post_ra>
